<compile_context>
chip_gen: v6e
topology: v6e:2x2x1
jax: 0.10.0
libtpu: 0.0.40
codegen_flags: <defaults>
</compile_context>

<pallas_src>
import functools

import jax
import jax.numpy as jnp
from jax.experimental import pallas as pl
from jax.experimental.pallas import tpu as pltpu


T_IN = 29      # required input length
T_PAD = 32     # time padded to a sublane-aligned 32 rows per batch element
HALF = 16      # conv positions computed per batch element (valid: 11 / 7 / 3)
L1, L2, L3 = 11, 7, 3   # valid output lengths of the three conv stages

# Static invariants: every VALID output position only reads valid upstream rows
# of its own batch element; halo positions (>= Lx) may read garbage but are
# never consumed by a valid downstream position.
assert (L1 - 1) * 2 + 9 <= T_IN          # conv1 (k=9, s=2) stays inside real input
assert (L2 - 1) + 5 <= L1                # conv2 (k=5, s=1) reads valid conv1 rows
assert (L3 - 1) + 5 <= L2                # conv3 (k=5, s=1) reads valid conv2 rows
assert max(L1, L2, L3) <= HALF


def _round_up(n, m):
    return -(-n // m) * m


# ----------------------------------------------------------------------------
# Host-side operand packing (weights resident in VMEM, sliced statically).
# ----------------------------------------------------------------------------
def pack_params(p):
    D = p["w1"].shape[0]
    od = p["pb"].shape[-1]
    o_w2 = _round_up(D, 16)            # 16-row alignment for bf16 sublane packing
    o_c1 = o_w2 + 32
    o_c2 = o_c1 + 9 * 32
    o_c3 = o_c2 + 5 * 32
    rows = o_c3 + 5 * 32

    # conv1 fused weight: even taps (k = 0,2,4,6,8) then odd taps (k = 1,3,5,7),
    # matching the window layout built in the kernel.
    cw1f = jnp.concatenate([p["cw1"][k] for k in (0, 2, 4, 6, 8, 1, 3, 5, 7)], axis=0)

    w_all = jnp.zeros((rows, 32), jnp.float32)
    w_all = w_all.at[0:D].set(p["w1"])
    w_all = w_all.at[o_w2:o_w2 + 32].set(p["w2"])
    w_all = w_all.at[o_c1:o_c1 + 288].set(cw1f)
    w_all = w_all.at[o_c2:o_c2 + 160].set(p["cw2"].reshape(160, 32))
    w_all = w_all.at[o_c3:o_c3 + 160].set(p["cw3"].reshape(160, 32))

    b_all = jnp.zeros((8, 32), jnp.float32)
    b_all = b_all.at[0].set(p["b1"][0]).at[1].set(p["b2"][0])
    b_all = b_all.at[2].set(p["cb1"][0]).at[3].set(p["cb2"][0]).at[4].set(p["cb3"][0])

    pw = p["pw3"].reshape(96, od)      # row t*32 + c  ==  torch_W.T[c*3 + t]
    offs = dict(D=D, od=od, o_w2=o_w2, o_c1=o_c1, o_c2=o_c2, o_c3=o_c3)
    return (w_all.astype(jnp.bfloat16), b_all,
            pw.astype(jnp.bfloat16), p["pb"].astype(jnp.float32), offs)


# ----------------------------------------------------------------------------
# Kernel
# ----------------------------------------------------------------------------
def _temporal_conv_kernel(x_ref, w_ref, b_ref, pw_ref, pb_ref, o_ref,
                          h1buf, hbuf, ebuf, obuf, winbuf, c1buf, c2buf, c3buf,
                          *, D, o_w2, o_c1, o_c2, o_c3):
    f32, bf16 = jnp.float32, jnp.bfloat16
    BB = o_ref.shape[0]            # batch elements in this block
    NT = BB * T_PAD                # (batch, time) rows
    HT = BB * HALF                 # rows per conv stage (16 per element)

    b1, b2 = b_ref[0:1, :], b_ref[1:2, :]
    cb1, cb2, cb3 = b_ref[2:3, :], b_ref[3:4, :], b_ref[4:5, :]

    # ---- channel_transform: two big matmuls, bf16 operands, f32 accumulation
    h1 = jnp.dot(x_ref[...], w_ref[0:D, :], preferred_element_type=f32) + b1
    h1buf[...] = jnp.maximum(h1, 0.0).astype(bf16)
    h2 = jnp.dot(h1buf[...], w_ref[o_w2:o_w2 + 32, :],
                 preferred_element_type=f32) + b2
    hbuf[0:NT, :] = jnp.maximum(h2, 0.0)
    hbuf[NT:NT + 16, :] = jnp.zeros((16, 32), f32)      # zero halo

    # ---- one-time even/odd deinterleave of the time axis (2 strided reads)
    ebuf[...] = hbuf[pl.ds(0, HT + 8, 2), :]            # t = 0, 2, 4, ...
    obuf[...] = hbuf[pl.ds(1, HT + 8, 2), :]            # t = 1, 3, 5, ...

    # ---- Conv1d(32,32,k=9,stride=2) + ReLU, fused over taps:
    #      window (HT, 288) = [even shifts 0..4 | odd shifts 0..3]
    for m in range(5):
        winbuf[0:HT, 32 * m:32 * m + 32] = ebuf[m:m + HT, :].astype(bf16)
    for m in range(4):
        winbuf[0:HT, 160 + 32 * m:160 + 32 * m + 32] = obuf[m:m + HT, :].astype(bf16)
    a1 = jnp.dot(winbuf[...], w_ref[o_c1:o_c1 + 288, :],
                 preferred_element_type=f32) + cb1
    c1buf[0:HT, :] = jnp.maximum(a1, 0.0)
    c1buf[HT:HT + 8, :] = jnp.zeros((8, 32), f32)

    # ---- Conv1d(32,32,k=5,stride=1) + ReLU, fused: window (HT, 160)
    for m in range(5):
        winbuf[0:HT, 32 * m:32 * m + 32] = c1buf[m:m + HT, :].astype(bf16)
    a2 = jnp.dot(winbuf[0:HT, 0:160], w_ref[o_c2:o_c2 + 160, :],
                 preferred_element_type=f32) + cb2
    c2buf[0:HT, :] = jnp.maximum(a2, 0.0)
    c2buf[HT:HT + 8, :] = jnp.zeros((8, 32), f32)

    # ---- Conv1d(32,32,k=5,stride=1) + ReLU, fused
    for m in range(5):
        winbuf[0:HT, 32 * m:32 * m + 32] = c2buf[m:m + HT, :].astype(bf16)
    a3 = jnp.dot(winbuf[0:HT, 0:160], w_ref[o_c3:o_c3 + 160, :],
                 preferred_element_type=f32) + cb3
    c3buf[...] = jnp.maximum(a3, 0.0)

    # ---- low_dim_proj: gather the 3 valid conv3 rows of every batch element,
    #      lane-concat to (BB, 96), one matmul, dense right-sized output.
    flat = jnp.concatenate(
        [c3buf[pl.ds(t, BB, HALF), :] for t in range(L3)], axis=1)   # (BB, 96)
    o_ref[...] = jnp.dot(flat.astype(bf16), pw_ref[...],
                         preferred_element_type=f32) + pb_ref[...]


# ----------------------------------------------------------------------------
# Wrapper
# ----------------------------------------------------------------------------
def temporal_conv(x, params, block_b=128):
    """x: (B, 29, Din) float32; returns (B, out_dim) float32."""
    B, T, D = x.shape
    assert T == T_IN, f"TemporalConv conv stack requires T={T_IN}, got {T}"

    w_all, b_all, pw, pb, offs = pack_params(params)
    od = offs["od"]

    if B <= block_b:
        BB = B                        # single grid step, block == full array
    else:
        assert block_b % 8 == 0, "block_b must be a multiple of 8 when B > block_b"
        BB = block_b
    nb = -(-B // BB)
    B_pad = nb * BB

    # pad time 29 -> 32 and batch B -> B_pad (one jnp.pad); the reshape that
    # folds (batch, time) onto the sublane axis is layout-free.
    x_p = jnp.pad(x.astype(jnp.bfloat16),
                  ((0, B_pad - B), (0, T_PAD - T), (0, 0)))
    x_flat = x_p.reshape(B_pad * T_PAD, D)

    NT = BB * T_PAD
    HT = BB * HALF
    W_ROWS = w_all.shape[0]

    kernel = functools.partial(
        _temporal_conv_kernel, D=D, o_w2=offs["o_w2"],
        o_c1=offs["o_c1"], o_c2=offs["o_c2"], o_c3=offs["o_c3"])

    const2 = lambda b: (0, 0)
    out = pl.pallas_call(
        kernel,
        out_shape=jax.ShapeDtypeStruct((B_pad, od), jnp.float32),
        grid=(nb,),
        in_specs=[
            pl.BlockSpec((NT, D), lambda b: (b, 0)),    # x rows for this block
            pl.BlockSpec((W_ROWS, 32), const2),         # packed weights (resident)
            pl.BlockSpec((8, 32), const2),              # packed biases
            pl.BlockSpec((96, od), const2),             # low_dim_proj weight
            pl.BlockSpec((1, od), const2),              # low_dim_proj bias
        ],
        out_specs=pl.BlockSpec((BB, od), lambda b: (b, 0)),
        scratch_shapes=[
            pltpu.VMEM((NT, 32), jnp.bfloat16),         # h1buf (linear1 out)
            pltpu.VMEM((NT + 16, 32), jnp.float32),     # hbuf  (linear2 out + halo)
            pltpu.VMEM((HT + 8, 32), jnp.float32),      # ebuf  (even time rows)
            pltpu.VMEM((HT + 8, 32), jnp.float32),      # obuf  (odd  time rows)
            pltpu.VMEM((HT, 288), jnp.bfloat16),        # winbuf (shared window matrix)
            pltpu.VMEM((HT + 8, 32), jnp.float32),      # conv1 out (+halo)
            pltpu.VMEM((HT + 8, 32), jnp.float32),      # conv2 out (+halo)
            pltpu.VMEM((HT, 32), jnp.float32),          # conv3 out
        ],
        compiler_params=pltpu.CompilerParams(
            dimension_semantics=("parallel",)),
    )(x_flat, w_all, b_all, pw, pb)

    return out[:B]


# ----------------------------------------------------------------------------
# Pure-JAX reference (mirrors the PyTorch forward exactly, f32).
# ----------------------------------------------------------------------------
def temporal_conv_ref(x, p):
    h = jnp.maximum(x @ p["w1"] + p["b1"], 0.0)
    h = jnp.maximum(h @ p["w2"] + p["b2"], 0.0)                     # (B, T, 32)

    def conv(h, cw, cb, stride):
        K = cw.shape[0]
        L = (h.shape[1] - K) // stride + 1
        acc = jnp.zeros((h.shape[0], L, cw.shape[2]), jnp.float32)
        for k in range(K):
            win = h[:, k:k + stride * (L - 1) + 1:stride, :]
            acc = acc + jnp.einsum("btc,cd->btd", win, cw[k])
        return jnp.maximum(acc + cb, 0.0)

    h = conv(h, p["cw1"], p["cb1"], 2)                              # (B, 11, 32)
    h = conv(h, p["cw2"], p["cb2"], 1)                              # (B, 7, 32)
    h = conv(h, p["cw3"], p["cb3"], 1)                              # (B, 3, 32)
    # PyTorch flattens (B, 32, 3) channel-major.
    flat = jnp.transpose(h, (0, 2, 1)).reshape(h.shape[0], -1)      # (B, 96)
    pw_flat = jnp.transpose(p["pw3"], (1, 0, 2)).reshape(96, -1)    # (96, od)
    return flat @ pw_flat + p["pb"]


def init_params(key, input_dim, output_dim):
    ks = jax.random.split(key, 12)
    u = lambda k, shape, s=0.1: jax.random.uniform(k, shape, jnp.float32, -s, s)
    return {
        "w1": u(ks[0], (input_dim, 32)),
        "b1": u(ks[1], (1, 32)),
        "w2": u(ks[2], (32, 32)),
        "b2": u(ks[3], (1, 32)),
        # conv weights: (K, C_in, C_out)  (== torch_weight.transpose(2,1,0))
        "cw1": u(ks[4], (9, 32, 32)),
        "cb1": u(ks[5], (1, 32)),
        "cw2": u(ks[6], (5, 32, 32)),
        "cb2": u(ks[7], (1, 32)),
        "cw3": u(ks[8], (5, 32, 32)),
        "cb3": u(ks[9], (1, 32)),
        # low_dim_proj weight stored as (3, 32, out_dim): pw3[t, c] == W.T[c*3+t]
        "pw3": u(ks[10], (3, 32, output_dim)),
        "pb": u(ks[11], (1, output_dim)),
    }


if __name__ == "__main__":
    INPUT_DIM, OUTPUT_DIM = 16, 8       # T = 29 is required by the conv stack
    key = jax.random.PRNGKey(0)
    kx, kp, kx2 = jax.random.split(key, 3)
    params = init_params(kp, INPUT_DIM, OUTPUT_DIM)

    # main run (small shapes implied by the module)
    B = 2
    x = jax.random.normal(kx, (B, T_IN, INPUT_DIM), jnp.float32)
    out = jax.block_until_ready(temporal_conv(x, params))
    ref = temporal_conv_ref(x, params)
    assert out.shape == (B, OUTPUT_DIM)
    err = float(jnp.max(jnp.abs(out - ref)))
    assert err < 3e-3, f"mismatch vs reference: {err}"

    # also exercise batch padding + a multi-step grid with resident weights
    B2 = 20
    x2 = jax.random.normal(kx2, (B2, T_IN, INPUT_DIM), jnp.float32)
    out2 = jax.block_until_ready(temporal_conv(x2, params, block_b=8))
    ref2 = temporal_conv_ref(x2, params)
    assert out2.shape == (B2, OUTPUT_DIM)
    err2 = float(jnp.max(jnp.abs(out2 - ref2)))
    assert err2 < 3e-3, f"mismatch vs reference (multi-block): {err2}"

    print("KERNEL_OK")
</pallas_src>

<mosaic_0001>
module attributes {stable_mosaic.version = 11 : i64} {
  func.func @_temporal_conv_kernel(%arg0: i32, %arg1: memref<64x16xbf16, #tpu.memory_space<vmem>>, %arg2: memref<656x32xbf16, #tpu.memory_space<vmem>>, %arg3: memref<8x32xf32, #tpu.memory_space<vmem>>, %arg4: memref<96x8xbf16, #tpu.memory_space<vmem>>, %arg5: memref<1x8xf32, #tpu.memory_space<vmem>>, %arg6: memref<2x8xf32, #tpu.memory_space<vmem>>, %arg7: memref<64x32xbf16, #tpu.memory_space<vmem>>, %arg8: memref<80x32xf32, #tpu.memory_space<vmem>>, %arg9: memref<40x32xf32, #tpu.memory_space<vmem>>, %arg10: memref<40x32xf32, #tpu.memory_space<vmem>>, %arg11: memref<32x288xbf16, #tpu.memory_space<vmem>>, %arg12: memref<40x32xf32, #tpu.memory_space<vmem>>, %arg13: memref<40x32xf32, #tpu.memory_space<vmem>>, %arg14: memref<32x32xf32, #tpu.memory_space<vmem>>) attributes {dimension_semantics = [#tpu.dimension_semantics<parallel>], iteration_bounds = array<i64: 1>, scalar_prefetch = 0 : i64, scratch_operands = 8 : i64, tpu.core_type = #tpu.core_type<tc>, window_params = [{transform_indices = @transform_0, window_bounds = array<i64: 64, 16>}, {pipeline_mode = #tpu.pipeline_mode<synchronous>, transform_indices = @transform_1, window_bounds = array<i64: 656, 32>}, {pipeline_mode = #tpu.pipeline_mode<synchronous>, transform_indices = @transform_2, window_bounds = array<i64: 8, 32>}, {pipeline_mode = #tpu.pipeline_mode<synchronous>, transform_indices = @transform_3, window_bounds = array<i64: 96, 8>}, {pipeline_mode = #tpu.pipeline_mode<synchronous>, transform_indices = @transform_4, window_bounds = array<i64: 1, 8>}, {transform_indices = @transform_5, window_bounds = array<i64: 2, 8>}]} {
    %c0 = arith.constant 0 : index
    %c0_0 = arith.constant 0 : index
    %0 = vector.load %arg3[%c0, %c0_0] : memref<8x32xf32, #tpu.memory_space<vmem>>, vector<1x32xf32>
    %c1 = arith.constant 1 : index
    %c0_1 = arith.constant 0 : index
    %1 = vector.load %arg3[%c1, %c0_1] : memref<8x32xf32, #tpu.memory_space<vmem>>, vector<1x32xf32>
    %c2 = arith.constant 2 : index
    %c0_2 = arith.constant 0 : index
    %2 = vector.load %arg3[%c2, %c0_2] : memref<8x32xf32, #tpu.memory_space<vmem>>, vector<1x32xf32>
    %c3 = arith.constant 3 : index
    %c0_3 = arith.constant 0 : index
    %3 = vector.load %arg3[%c3, %c0_3] : memref<8x32xf32, #tpu.memory_space<vmem>>, vector<1x32xf32>
    %c4 = arith.constant 4 : index
    %c0_4 = arith.constant 0 : index
    %4 = vector.load %arg3[%c4, %c0_4] : memref<8x32xf32, #tpu.memory_space<vmem>>, vector<1x32xf32>
    %c0_5 = arith.constant 0 : index
    %c0_6 = arith.constant 0 : index
    %5 = vector.load %arg1[%c0_5, %c0_6] : memref<64x16xbf16, #tpu.memory_space<vmem>>, vector<64x16xbf16>
    %c0_7 = arith.constant 0 : index
    %c0_8 = arith.constant 0 : index
    %6 = vector.load %arg2[%c0_7, %c0_8] : memref<656x32xbf16, #tpu.memory_space<vmem>>, vector<16x32xbf16>
    %cst = arith.constant dense<0.000000e+00> : vector<64x32xf32>
    %7 = tpu.matmul %5, %6, %cst {dimension_numbers = #tpu.dot_dimension_numbers<[1], [0], [0], [1], [0, 0, 1, 1], [], []>} : vector<64x16xbf16>, vector<16x32xbf16>, vector<64x32xf32> -> vector<64x32xf32>
    %8 = vector.broadcast %0 : vector<1x32xf32> to vector<64x32xf32>
    %9 = arith.addf %7, %8 : vector<64x32xf32>
    %cst_9 = arith.constant 0.000000e+00 : f32
    %10 = vector.broadcast %cst_9 : f32 to vector<64x32xf32>
    %11 = arith.maximumf %9, %10 : vector<64x32xf32>
    %12 = arith.truncf %11 : vector<64x32xf32> to vector<64x32xbf16>
    %c0_10 = arith.constant 0 : index
    %c0_11 = arith.constant 0 : index
    %13 = vector.load %arg7[%c0_10, %c0_11] : memref<64x32xbf16, #tpu.memory_space<vmem>>, vector<64x32xbf16>
    tpu.vector_store %arg7[%c0_10, %c0_11], %12 {strides = array<i32>} : memref<64x32xbf16, #tpu.memory_space<vmem>>, vector<64x32xbf16>,
    %c0_12 = arith.constant 0 : index
    %c0_13 = arith.constant 0 : index
    %14 = vector.load %arg7[%c0_12, %c0_13] : memref<64x32xbf16, #tpu.memory_space<vmem>>, vector<64x32xbf16>
    %c16 = arith.constant 16 : index
    %c0_14 = arith.constant 0 : index
    %15 = vector.load %arg2[%c16, %c0_14] : memref<656x32xbf16, #tpu.memory_space<vmem>>, vector<32x32xbf16>
    %cst_15 = arith.constant dense<0.000000e+00> : vector<64x32xf32>
    %16 = tpu.matmul %14, %15, %cst_15 {dimension_numbers = #tpu.dot_dimension_numbers<[1], [0], [0], [1], [0, 0, 1, 1], [], []>} : vector<64x32xbf16>, vector<32x32xbf16>, vector<64x32xf32> -> vector<64x32xf32>
    %17 = vector.broadcast %1 : vector<1x32xf32> to vector<64x32xf32>
    %18 = arith.addf %16, %17 : vector<64x32xf32>
    %cst_16 = arith.constant 0.000000e+00 : f32
    %19 = vector.broadcast %cst_16 : f32 to vector<64x32xf32>
    %20 = arith.maximumf %18, %19 : vector<64x32xf32>
    %c0_17 = arith.constant 0 : index
    %c0_18 = arith.constant 0 : index
    %21 = vector.load %arg8[%c0_17, %c0_18] : memref<80x32xf32, #tpu.memory_space<vmem>>, vector<64x32xf32>
    tpu.vector_store %arg8[%c0_17, %c0_18], %20 {strides = array<i32>} : memref<80x32xf32, #tpu.memory_space<vmem>>, vector<64x32xf32>,
    %cst_19 = arith.constant 0.000000e+00 : f32
    %22 = vector.broadcast %cst_19 : f32 to vector<16x32xf32>
    %c64 = arith.constant 64 : index
    %c0_20 = arith.constant 0 : index
    %23 = vector.load %arg8[%c64, %c0_20] : memref<80x32xf32, #tpu.memory_space<vmem>>, vector<16x32xf32>
    tpu.vector_store %arg8[%c64, %c0_20], %22 {strides = array<i32>} : memref<80x32xf32, #tpu.memory_space<vmem>>, vector<16x32xf32>,
    %c0_21 = arith.constant 0 : index
    %c0_22 = arith.constant 0 : index
    %24 = tpu.strided_load %arg8[%c0_21, %c0_22] {strides = array<i32: 2, 1>} : memref<80x32xf32, #tpu.memory_space<vmem>>, vector<40x32xf32>
    %c0_23 = arith.constant 0 : index
    %c0_24 = arith.constant 0 : index
    %25 = vector.load %arg9[%c0_23, %c0_24] : memref<40x32xf32, #tpu.memory_space<vmem>>, vector<40x32xf32>
    tpu.vector_store %arg9[%c0_23, %c0_24], %24 {strides = array<i32>} : memref<40x32xf32, #tpu.memory_space<vmem>>, vector<40x32xf32>,
    %c1_25 = arith.constant 1 : index
    %c0_26 = arith.constant 0 : index
    %26 = tpu.strided_load %arg8[%c1_25, %c0_26] {strides = array<i32: 2, 1>} : memref<80x32xf32, #tpu.memory_space<vmem>>, vector<40x32xf32>
    %c0_27 = arith.constant 0 : index
    %c0_28 = arith.constant 0 : index
    %27 = vector.load %arg10[%c0_27, %c0_28] : memref<40x32xf32, #tpu.memory_space<vmem>>, vector<40x32xf32>
    tpu.vector_store %arg10[%c0_27, %c0_28], %26 {strides = array<i32>} : memref<40x32xf32, #tpu.memory_space<vmem>>, vector<40x32xf32>,
    %c0_29 = arith.constant 0 : index
    %c0_30 = arith.constant 0 : index
    %28 = vector.load %arg9[%c0_29, %c0_30] : memref<40x32xf32, #tpu.memory_space<vmem>>, vector<32x32xf32>
    %29 = arith.truncf %28 : vector<32x32xf32> to vector<32x32xbf16>
    %c0_31 = arith.constant 0 : index
    %c0_32 = arith.constant 0 : index
    %30 = vector.load %arg11[%c0_31, %c0_32] : memref<32x288xbf16, #tpu.memory_space<vmem>>, vector<32x32xbf16>
    tpu.vector_store %arg11[%c0_31, %c0_32], %29 {strides = array<i32>} : memref<32x288xbf16, #tpu.memory_space<vmem>>, vector<32x32xbf16>,
    %c1_33 = arith.constant 1 : index
    %c0_34 = arith.constant 0 : index
    %31 = vector.load %arg9[%c1_33, %c0_34] : memref<40x32xf32, #tpu.memory_space<vmem>>, vector<32x32xf32>
    %32 = arith.truncf %31 : vector<32x32xf32> to vector<32x32xbf16>
    %c0_35 = arith.constant 0 : index
    %c32 = arith.constant 32 : index
    %33 = vector.load %arg11[%c0_35, %c32] : memref<32x288xbf16, #tpu.memory_space<vmem>>, vector<32x32xbf16>
    tpu.vector_store %arg11[%c0_35, %c32], %32 {strides = array<i32>} : memref<32x288xbf16, #tpu.memory_space<vmem>>, vector<32x32xbf16>,
    %c2_36 = arith.constant 2 : index
    %c0_37 = arith.constant 0 : index
    %34 = vector.load %arg9[%c2_36, %c0_37] : memref<40x32xf32, #tpu.memory_space<vmem>>, vector<32x32xf32>
    %35 = arith.truncf %34 : vector<32x32xf32> to vector<32x32xbf16>
    %c0_38 = arith.constant 0 : index
    %c64_39 = arith.constant 64 : index
    %36 = vector.load %arg11[%c0_38, %c64_39] : memref<32x288xbf16, #tpu.memory_space<vmem>>, vector<32x32xbf16>
    tpu.vector_store %arg11[%c0_38, %c64_39], %35 {strides = array<i32>} : memref<32x288xbf16, #tpu.memory_space<vmem>>, vector<32x32xbf16>,
    %c3_40 = arith.constant 3 : index
    %c0_41 = arith.constant 0 : index
    %37 = vector.load %arg9[%c3_40, %c0_41] : memref<40x32xf32, #tpu.memory_space<vmem>>, vector<32x32xf32>
    %38 = arith.truncf %37 : vector<32x32xf32> to vector<32x32xbf16>
    %c0_42 = arith.constant 0 : index
    %c96 = arith.constant 96 : index
    %39 = vector.load %arg11[%c0_42, %c96] : memref<32x288xbf16, #tpu.memory_space<vmem>>, vector<32x32xbf16>
    tpu.vector_store %arg11[%c0_42, %c96], %38 {strides = array<i32>} : memref<32x288xbf16, #tpu.memory_space<vmem>>, vector<32x32xbf16>,
    %c4_43 = arith.constant 4 : index
    %c0_44 = arith.constant 0 : index
    %40 = vector.load %arg9[%c4_43, %c0_44] : memref<40x32xf32, #tpu.memory_space<vmem>>, vector<32x32xf32>
    %41 = arith.truncf %40 : vector<32x32xf32> to vector<32x32xbf16>
    %c0_45 = arith.constant 0 : index
    %c128 = arith.constant 128 : index
    %42 = vector.load %arg11[%c0_45, %c128] : memref<32x288xbf16, #tpu.memory_space<vmem>>, vector<32x32xbf16>
    tpu.vector_store %arg11[%c0_45, %c128], %41 {strides = array<i32>} : memref<32x288xbf16, #tpu.memory_space<vmem>>, vector<32x32xbf16>,
    %c0_46 = arith.constant 0 : index
    %c0_47 = arith.constant 0 : index
    %43 = vector.load %arg10[%c0_46, %c0_47] : memref<40x32xf32, #tpu.memory_space<vmem>>, vector<32x32xf32>
    %44 = arith.truncf %43 : vector<32x32xf32> to vector<32x32xbf16>
    %c0_48 = arith.constant 0 : index
    %c160 = arith.constant 160 : index
    %45 = vector.load %arg11[%c0_48, %c160] : memref<32x288xbf16, #tpu.memory_space<vmem>>, vector<32x32xbf16>
    tpu.vector_store %arg11[%c0_48, %c160], %44 {strides = array<i32>} : memref<32x288xbf16, #tpu.memory_space<vmem>>, vector<32x32xbf16>,
    %c1_49 = arith.constant 1 : index
    %c0_50 = arith.constant 0 : index
    %46 = vector.load %arg10[%c1_49, %c0_50] : memref<40x32xf32, #tpu.memory_space<vmem>>, vector<32x32xf32>
    %47 = arith.truncf %46 : vector<32x32xf32> to vector<32x32xbf16>
    %c0_51 = arith.constant 0 : index
    %c192 = arith.constant 192 : index
    %48 = vector.load %arg11[%c0_51, %c192] : memref<32x288xbf16, #tpu.memory_space<vmem>>, vector<32x32xbf16>
    tpu.vector_store %arg11[%c0_51, %c192], %47 {strides = array<i32>} : memref<32x288xbf16, #tpu.memory_space<vmem>>, vector<32x32xbf16>,
    %c2_52 = arith.constant 2 : index
    %c0_53 = arith.constant 0 : index
    %49 = vector.load %arg10[%c2_52, %c0_53] : memref<40x32xf32, #tpu.memory_space<vmem>>, vector<32x32xf32>
    %50 = arith.truncf %49 : vector<32x32xf32> to vector<32x32xbf16>
    %c0_54 = arith.constant 0 : index
    %c224 = arith.constant 224 : index
    %51 = vector.load %arg11[%c0_54, %c224] : memref<32x288xbf16, #tpu.memory_space<vmem>>, vector<32x32xbf16>
    tpu.vector_store %arg11[%c0_54, %c224], %50 {strides = array<i32>} : memref<32x288xbf16, #tpu.memory_space<vmem>>, vector<32x32xbf16>,
    %c3_55 = arith.constant 3 : index
    %c0_56 = arith.constant 0 : index
    %52 = vector.load %arg10[%c3_55, %c0_56] : memref<40x32xf32, #tpu.memory_space<vmem>>, vector<32x32xf32>
    %53 = arith.truncf %52 : vector<32x32xf32> to vector<32x32xbf16>
    %c0_57 = arith.constant 0 : index
    %c256 = arith.constant 256 : index
    %54 = vector.load %arg11[%c0_57, %c256] : memref<32x288xbf16, #tpu.memory_space<vmem>>, vector<32x32xbf16>
    tpu.vector_store %arg11[%c0_57, %c256], %53 {strides = array<i32>} : memref<32x288xbf16, #tpu.memory_space<vmem>>, vector<32x32xbf16>,
    %c0_58 = arith.constant 0 : index
    %c0_59 = arith.constant 0 : index
    %55 = vector.load %arg11[%c0_58, %c0_59] : memref<32x288xbf16, #tpu.memory_space<vmem>>, vector<32x288xbf16>
    %c48 = arith.constant 48 : index
    %c0_60 = arith.constant 0 : index
    %56 = vector.load %arg2[%c48, %c0_60] : memref<656x32xbf16, #tpu.memory_space<vmem>>, vector<288x32xbf16>
    %cst_61 = arith.constant dense<0.000000e+00> : vector<32x32xf32>
    %57 = tpu.matmul %55, %56, %cst_61 {dimension_numbers = #tpu.dot_dimension_numbers<[1], [0], [0], [1], [0, 0, 1, 1], [], []>} : vector<32x288xbf16>, vector<288x32xbf16>, vector<32x32xf32> -> vector<32x32xf32>
    %58 = vector.broadcast %2 : vector<1x32xf32> to vector<32x32xf32>
    %59 = arith.addf %57, %58 : vector<32x32xf32>
    %cst_62 = arith.constant 0.000000e+00 : f32
    %60 = vector.broadcast %cst_62 : f32 to vector<32x32xf32>
    %61 = arith.maximumf %59, %60 : vector<32x32xf32>
    %c0_63 = arith.constant 0 : index
    %c0_64 = arith.constant 0 : index
    %62 = vector.load %arg12[%c0_63, %c0_64] : memref<40x32xf32, #tpu.memory_space<vmem>>, vector<32x32xf32>
    tpu.vector_store %arg12[%c0_63, %c0_64], %61 {strides = array<i32>} : memref<40x32xf32, #tpu.memory_space<vmem>>, vector<32x32xf32>,
    %cst_65 = arith.constant 0.000000e+00 : f32
    %63 = vector.broadcast %cst_65 : f32 to vector<8x32xf32>
    %c32_66 = arith.constant 32 : index
    %c0_67 = arith.constant 0 : index
    %64 = vector.load %arg12[%c32_66, %c0_67] : memref<40x32xf32, #tpu.memory_space<vmem>>, vector<8x32xf32>
    tpu.vector_store %arg12[%c32_66, %c0_67], %63 {strides = array<i32>} : memref<40x32xf32, #tpu.memory_space<vmem>>, vector<8x32xf32>,
    %c0_68 = arith.constant 0 : index
    %c0_69 = arith.constant 0 : index
    %65 = vector.load %arg12[%c0_68, %c0_69] : memref<40x32xf32, #tpu.memory_space<vmem>>, vector<32x32xf32>
    %66 = arith.truncf %65 : vector<32x32xf32> to vector<32x32xbf16>
    %c0_70 = arith.constant 0 : index
    %c0_71 = arith.constant 0 : index
    %67 = vector.load %arg11[%c0_70, %c0_71] : memref<32x288xbf16, #tpu.memory_space<vmem>>, vector<32x32xbf16>
    tpu.vector_store %arg11[%c0_70, %c0_71], %66 {strides = array<i32>} : memref<32x288xbf16, #tpu.memory_space<vmem>>, vector<32x32xbf16>,
    %c1_72 = arith.constant 1 : index
    %c0_73 = arith.constant 0 : index
    %68 = vector.load %arg12[%c1_72, %c0_73] : memref<40x32xf32, #tpu.memory_space<vmem>>, vector<32x32xf32>
    %69 = arith.truncf %68 : vector<32x32xf32> to vector<32x32xbf16>
    %c0_74 = arith.constant 0 : index
    %c32_75 = arith.constant 32 : index
    %70 = vector.load %arg11[%c0_74, %c32_75] : memref<32x288xbf16, #tpu.memory_space<vmem>>, vector<32x32xbf16>
    tpu.vector_store %arg11[%c0_74, %c32_75], %69 {strides = array<i32>} : memref<32x288xbf16, #tpu.memory_space<vmem>>, vector<32x32xbf16>,
    %c2_76 = arith.constant 2 : index
    %c0_77 = arith.constant 0 : index
    %71 = vector.load %arg12[%c2_76, %c0_77] : memref<40x32xf32, #tpu.memory_space<vmem>>, vector<32x32xf32>
    %72 = arith.truncf %71 : vector<32x32xf32> to vector<32x32xbf16>
    %c0_78 = arith.constant 0 : index
    %c64_79 = arith.constant 64 : index
    %73 = vector.load %arg11[%c0_78, %c64_79] : memref<32x288xbf16, #tpu.memory_space<vmem>>, vector<32x32xbf16>
    tpu.vector_store %arg11[%c0_78, %c64_79], %72 {strides = array<i32>} : memref<32x288xbf16, #tpu.memory_space<vmem>>, vector<32x32xbf16>,
    %c3_80 = arith.constant 3 : index
    %c0_81 = arith.constant 0 : index
    %74 = vector.load %arg12[%c3_80, %c0_81] : memref<40x32xf32, #tpu.memory_space<vmem>>, vector<32x32xf32>
    %75 = arith.truncf %74 : vector<32x32xf32> to vector<32x32xbf16>
    %c0_82 = arith.constant 0 : index
    %c96_83 = arith.constant 96 : index
    %76 = vector.load %arg11[%c0_82, %c96_83] : memref<32x288xbf16, #tpu.memory_space<vmem>>, vector<32x32xbf16>
    tpu.vector_store %arg11[%c0_82, %c96_83], %75 {strides = array<i32>} : memref<32x288xbf16, #tpu.memory_space<vmem>>, vector<32x32xbf16>,
    %c4_84 = arith.constant 4 : index
    %c0_85 = arith.constant 0 : index
    %77 = vector.load %arg12[%c4_84, %c0_85] : memref<40x32xf32, #tpu.memory_space<vmem>>, vector<32x32xf32>
    %78 = arith.truncf %77 : vector<32x32xf32> to vector<32x32xbf16>
    %c0_86 = arith.constant 0 : index
    %c128_87 = arith.constant 128 : index
    %79 = vector.load %arg11[%c0_86, %c128_87] : memref<32x288xbf16, #tpu.memory_space<vmem>>, vector<32x32xbf16>
    tpu.vector_store %arg11[%c0_86, %c128_87], %78 {strides = array<i32>} : memref<32x288xbf16, #tpu.memory_space<vmem>>, vector<32x32xbf16>,
    %c0_88 = arith.constant 0 : index
    %c0_89 = arith.constant 0 : index
    %80 = vector.load %arg11[%c0_88, %c0_89] : memref<32x288xbf16, #tpu.memory_space<vmem>>, vector<32x160xbf16>
    %c336 = arith.constant 336 : index
    %c0_90 = arith.constant 0 : index
    %81 = vector.load %arg2[%c336, %c0_90] : memref<656x32xbf16, #tpu.memory_space<vmem>>, vector<160x32xbf16>
    %cst_91 = arith.constant dense<0.000000e+00> : vector<32x32xf32>
    %82 = tpu.matmul %80, %81, %cst_91 {dimension_numbers = #tpu.dot_dimension_numbers<[1], [0], [0], [1], [0, 0, 1, 1], [], []>} : vector<32x160xbf16>, vector<160x32xbf16>, vector<32x32xf32> -> vector<32x32xf32>
    %83 = vector.broadcast %3 : vector<1x32xf32> to vector<32x32xf32>
    %84 = arith.addf %82, %83 : vector<32x32xf32>
    %cst_92 = arith.constant 0.000000e+00 : f32
    %85 = vector.broadcast %cst_92 : f32 to vector<32x32xf32>
    %86 = arith.maximumf %84, %85 : vector<32x32xf32>
    %c0_93 = arith.constant 0 : index
    %c0_94 = arith.constant 0 : index
    %87 = vector.load %arg13[%c0_93, %c0_94] : memref<40x32xf32, #tpu.memory_space<vmem>>, vector<32x32xf32>
    tpu.vector_store %arg13[%c0_93, %c0_94], %86 {strides = array<i32>} : memref<40x32xf32, #tpu.memory_space<vmem>>, vector<32x32xf32>,
    %cst_95 = arith.constant 0.000000e+00 : f32
    %88 = vector.broadcast %cst_95 : f32 to vector<8x32xf32>
    %c32_96 = arith.constant 32 : index
    %c0_97 = arith.constant 0 : index
    %89 = vector.load %arg13[%c32_96, %c0_97] : memref<40x32xf32, #tpu.memory_space<vmem>>, vector<8x32xf32>
    tpu.vector_store %arg13[%c32_96, %c0_97], %88 {strides = array<i32>} : memref<40x32xf32, #tpu.memory_space<vmem>>, vector<8x32xf32>,
    %c0_98 = arith.constant 0 : index
    %c0_99 = arith.constant 0 : index
    %90 = vector.load %arg13[%c0_98, %c0_99] : memref<40x32xf32, #tpu.memory_space<vmem>>, vector<32x32xf32>
    %91 = arith.truncf %90 : vector<32x32xf32> to vector<32x32xbf16>
    %c0_100 = arith.constant 0 : index
    %c0_101 = arith.constant 0 : index
    %92 = vector.load %arg11[%c0_100, %c0_101] : memref<32x288xbf16, #tpu.memory_space<vmem>>, vector<32x32xbf16>
    tpu.vector_store %arg11[%c0_100, %c0_101], %91 {strides = array<i32>} : memref<32x288xbf16, #tpu.memory_space<vmem>>, vector<32x32xbf16>,
    %c1_102 = arith.constant 1 : index
    %c0_103 = arith.constant 0 : index
    %93 = vector.load %arg13[%c1_102, %c0_103] : memref<40x32xf32, #tpu.memory_space<vmem>>, vector<32x32xf32>
    %94 = arith.truncf %93 : vector<32x32xf32> to vector<32x32xbf16>
    %c0_104 = arith.constant 0 : index
    %c32_105 = arith.constant 32 : index
    %95 = vector.load %arg11[%c0_104, %c32_105] : memref<32x288xbf16, #tpu.memory_space<vmem>>, vector<32x32xbf16>
    tpu.vector_store %arg11[%c0_104, %c32_105], %94 {strides = array<i32>} : memref<32x288xbf16, #tpu.memory_space<vmem>>, vector<32x32xbf16>,
    %c2_106 = arith.constant 2 : index
    %c0_107 = arith.constant 0 : index
    %96 = vector.load %arg13[%c2_106, %c0_107] : memref<40x32xf32, #tpu.memory_space<vmem>>, vector<32x32xf32>
    %97 = arith.truncf %96 : vector<32x32xf32> to vector<32x32xbf16>
    %c0_108 = arith.constant 0 : index
    %c64_109 = arith.constant 64 : index
    %98 = vector.load %arg11[%c0_108, %c64_109] : memref<32x288xbf16, #tpu.memory_space<vmem>>, vector<32x32xbf16>
    tpu.vector_store %arg11[%c0_108, %c64_109], %97 {strides = array<i32>} : memref<32x288xbf16, #tpu.memory_space<vmem>>, vector<32x32xbf16>,
    %c3_110 = arith.constant 3 : index
    %c0_111 = arith.constant 0 : index
    %99 = vector.load %arg13[%c3_110, %c0_111] : memref<40x32xf32, #tpu.memory_space<vmem>>, vector<32x32xf32>
    %100 = arith.truncf %99 : vector<32x32xf32> to vector<32x32xbf16>
    %c0_112 = arith.constant 0 : index
    %c96_113 = arith.constant 96 : index
    %101 = vector.load %arg11[%c0_112, %c96_113] : memref<32x288xbf16, #tpu.memory_space<vmem>>, vector<32x32xbf16>
    tpu.vector_store %arg11[%c0_112, %c96_113], %100 {strides = array<i32>} : memref<32x288xbf16, #tpu.memory_space<vmem>>, vector<32x32xbf16>,
    %c4_114 = arith.constant 4 : index
    %c0_115 = arith.constant 0 : index
    %102 = vector.load %arg13[%c4_114, %c0_115] : memref<40x32xf32, #tpu.memory_space<vmem>>, vector<32x32xf32>
    %103 = arith.truncf %102 : vector<32x32xf32> to vector<32x32xbf16>
    %c0_116 = arith.constant 0 : index
    %c128_117 = arith.constant 128 : index
    %104 = vector.load %arg11[%c0_116, %c128_117] : memref<32x288xbf16, #tpu.memory_space<vmem>>, vector<32x32xbf16>
    tpu.vector_store %arg11[%c0_116, %c128_117], %103 {strides = array<i32>} : memref<32x288xbf16, #tpu.memory_space<vmem>>, vector<32x32xbf16>,
    %c0_118 = arith.constant 0 : index
    %c0_119 = arith.constant 0 : index
    %105 = vector.load %arg11[%c0_118, %c0_119] : memref<32x288xbf16, #tpu.memory_space<vmem>>, vector<32x160xbf16>
    %c496 = arith.constant 496 : index
    %c0_120 = arith.constant 0 : index
    %106 = vector.load %arg2[%c496, %c0_120] : memref<656x32xbf16, #tpu.memory_space<vmem>>, vector<160x32xbf16>
    %cst_121 = arith.constant dense<0.000000e+00> : vector<32x32xf32>
    %107 = tpu.matmul %105, %106, %cst_121 {dimension_numbers = #tpu.dot_dimension_numbers<[1], [0], [0], [1], [0, 0, 1, 1], [], []>} : vector<32x160xbf16>, vector<160x32xbf16>, vector<32x32xf32> -> vector<32x32xf32>
    %108 = vector.broadcast %4 : vector<1x32xf32> to vector<32x32xf32>
    %109 = arith.addf %107, %108 : vector<32x32xf32>
    %cst_122 = arith.constant 0.000000e+00 : f32
    %110 = vector.broadcast %cst_122 : f32 to vector<32x32xf32>
    %111 = arith.maximumf %109, %110 : vector<32x32xf32>
    %c0_123 = arith.constant 0 : index
    %c0_124 = arith.constant 0 : index
    %112 = vector.load %arg14[%c0_123, %c0_124] : memref<32x32xf32, #tpu.memory_space<vmem>>, vector<32x32xf32>
    tpu.vector_store %arg14[%c0_123, %c0_124], %111 {strides = array<i32>} : memref<32x32xf32, #tpu.memory_space<vmem>>, vector<32x32xf32>,
    %c0_125 = arith.constant 0 : index
    %c0_126 = arith.constant 0 : index
    %113 = tpu.strided_load %arg14[%c0_125, %c0_126] {strides = array<i32: 16, 1>} : memref<32x32xf32, #tpu.memory_space<vmem>>, vector<2x32xf32>
    %c1_127 = arith.constant 1 : index
    %c0_128 = arith.constant 0 : index
    %114 = tpu.strided_load %arg14[%c1_127, %c0_128] {strides = array<i32: 16, 1>} : memref<32x32xf32, #tpu.memory_space<vmem>>, vector<2x32xf32>
    %c2_129 = arith.constant 2 : index
    %c0_130 = arith.constant 0 : index
    %115 = tpu.strided_load %arg14[%c2_129, %c0_130] {strides = array<i32: 16, 1>} : memref<32x32xf32, #tpu.memory_space<vmem>>, vector<2x32xf32>
    %116 = tpu.concatenate %113, %114, %115 in 1 : vector<2x32xf32>, vector<2x32xf32>, vector<2x32xf32> -> vector<2x96xf32>
    %117 = arith.truncf %116 : vector<2x96xf32> to vector<2x96xbf16>
    %c0_131 = arith.constant 0 : index
    %c0_132 = arith.constant 0 : index
    %118 = vector.load %arg4[%c0_131, %c0_132] : memref<96x8xbf16, #tpu.memory_space<vmem>>, vector<96x8xbf16>
    %cst_133 = arith.constant dense<0.000000e+00> : vector<2x8xf32>
    %119 = tpu.matmul %117, %118, %cst_133 {dimension_numbers = #tpu.dot_dimension_numbers<[1], [0], [0], [1], [0, 0, 1, 1], [], []>} : vector<2x96xbf16>, vector<96x8xbf16>, vector<2x8xf32> -> vector<2x8xf32>
    %c0_134 = arith.constant 0 : index
    %c0_135 = arith.constant 0 : index
    %120 = vector.load %arg5[%c0_134, %c0_135] : memref<1x8xf32, #tpu.memory_space<vmem>>, vector<1x8xf32>
    %121 = vector.broadcast %120 : vector<1x8xf32> to vector<2x8xf32>
    %122 = arith.addf %119, %121 : vector<2x8xf32>
    %c0_136 = arith.constant 0 : index
    %c0_137 = arith.constant 0 : index
    %123 = vector.load %arg6[%c0_136, %c0_137] : memref<2x8xf32, #tpu.memory_space<vmem>>, vector<2x8xf32>
    tpu.vector_store %arg6[%c0_136, %c0_137], %122 {strides = array<i32>} : memref<2x8xf32, #tpu.memory_space<vmem>>, vector<2x8xf32>,
    return
  }
  func.func @transform_0(%arg0: i32) -> (i32, i32) {
    %c0_i32 = arith.constant 0 : i32
    %c0_i32_0 = arith.constant 0 : i32
    return %arg0, %c0_i32 : i32, i32
  }
  func.func @transform_1(%arg0: i32) -> (i32, i32) {
    %c0_i32 = arith.constant 0 : i32
    %c0_i32_0 = arith.constant 0 : i32
    %c0_i32_1 = arith.constant 0 : i32
    return %c0_i32, %c0_i32_0 : i32, i32
  }
  func.func @transform_2(%arg0: i32) -> (i32, i32) {
    %c0_i32 = arith.constant 0 : i32
    %c0_i32_0 = arith.constant 0 : i32
    %c0_i32_1 = arith.constant 0 : i32
    return %c0_i32, %c0_i32_0 : i32, i32
  }
  func.func @transform_3(%arg0: i32) -> (i32, i32) {
    %c0_i32 = arith.constant 0 : i32
    %c0_i32_0 = arith.constant 0 : i32
    %c0_i32_1 = arith.constant 0 : i32
    return %c0_i32, %c0_i32_0 : i32, i32
  }
  func.func @transform_4(%arg0: i32) -> (i32, i32) {
    %c0_i32 = arith.constant 0 : i32
    %c0_i32_0 = arith.constant 0 : i32
    %c0_i32_1 = arith.constant 0 : i32
    return %c0_i32, %c0_i32_0 : i32, i32
  }
  func.func @transform_5(%arg0: i32) -> (i32, i32) {
    %c0_i32 = arith.constant 0 : i32
    %c0_i32_0 = arith.constant 0 : i32
    return %arg0, %c0_i32 : i32, i32
  }
}

</mosaic_0001>

<bundles_post_ra>
// kernel: tpu_custom_call.1
= control target key start
LH: loop header
LB: loop body
LE: loop exit
PB: predicated region body
PF: predicated region fallthrough
CT: control target
= control target key end

     0   :  { %vm67_vm0 = vcmask 130048   ;;  %s2562_s0 = inlined_call_operand.vmem [shape: bf16[64,16], index: 0, kind: input, shape index: {}]   ;;  %s2563_s1 = inlined_call_operand.vmem [shape: bf16[656,32], index: 1, kind: input, shape index: {}]   ;;  %s2564_s2 = inlined_call_operand.vmem [shape: f32[8,32], index: 2, kind: input, shape index: {}]   ;;  %s2565_s3 = inlined_call_operand.vmem [shape: bf16[96,8], index: 3, kind: input, shape index: {}]   ;;  %s2566_s4 = inlined_call_operand.vmem [shape: f32[1,8], index: 4, kind: input, shape index: {}]   ;;  %s2567_s5 = inlined_call_operand.hbm [shape: f32[2,8], index: 5, kind: output, shape index: {}]  }
   0x1   :  { %v2053_v0 = vld [vmem:[%s2563_s1] sm:$0xff]   ;;  %v2055_v2 = vld [vmem:[%s2562_s0 + $0x8] sm:$0xff]   ;;  %v2056_v3 = vld [vmem:[%s2562_s0 + $0x10] sm:$0xff]  }
   0x2   :  { %v2054_v1 = vld [vmem:[%s2562_s0] sm:$0xff]   ;;  %2000 = vmatprep.subr.bf16.mxu0 %v2053_v0  ;;  %v2057_v4 = vld [vmem:[%s2562_s0 + $0x18] sm:$0xff]  }
   0x3   :  { %2001 = vmatpush3.bf16.msra.mxu0 %v2053_v0  ;;  %2002 = vmatprep.mubr.msk.bf16.mxu0 %vm67_vm0, %v2054_v1 }
   0x6   :  { %2003 = vmatmul.mubr.msk.bf16.vlgmr.msra.gmra.mxu0 %vm67_vm0, %v2055_v2 }
   0x7   :  { %2006 = vmatprep.mubr.msk.bf16.mxu0 %vm67_vm0, %v2056_v3 }
   0xe   :  { %2007 = vmatmul.mubr.msk.bf16.gmra.mxu0 %vm67_vm0, %v2057_v4 }
   0xf   :  { %10 = vsyncpa [#allocation11], 0  ;;  %v2058_v5 = vld [vmem:[%s2563_s1 + $0x10] sm:$0xff]   ;;  %v2059_v6 = vld [vmem:[%s2563_s1 + $0x8] sm:$0xff]   ;;  %vm185_vm1 = vcmask 257024   ;;  %vm242_vm2 = vcmask 261120  }
  0x10   :  { %2010 = vmatprep.subr.bf16.mxu1 %v2058_v5  ;;  %v1692_v7 = vld [vmem:[%s2564_s2] ss:$0 sm:$0xff]  ;;  %v2143_v44 = vmov 0.0   ;;  %v2065_v48 = vld [vmem:[%s2563_s1 + $0x98] sm:$0xff]   ;;  %v1710_v49 = vld [vmem:[%s2564_s2 + $0x1] ss:$0 sm:$0xff] }
  0x11   :  { %2011 = vmatpush3.bf16.msra.mxu1 %v2058_v5  ;;  %336 = vst.msk [vmem:[#allocation3 + $0x40] sm:$0xff] %vm242_vm2, %v2143_v44  ;;  %337 = vst.msk [vmem:[#allocation3 + $0x48] sm:$0xff] %vm242_vm2, %v2143_v44  ;;  %v2064_v47 = vld [vmem:[%s2563_s1 + $0xa0] sm:$0xff]   ;;  %s2144_s14 = smov 32   ;;  %s2145_s19 = smov 64   ;;  %vm419_vm3 = vcmask 519424  }
  0x12   :  { %2012 = vmatprep.subr.bf16.mxu1 %v2059_v6  ;;  %932 = vst.msk [vmem:[#allocation7 + $0x20] sm:$0xff] %vm242_vm2, %v2143_v44  ;;  %1246 = vst.msk [vmem:[#allocation8 + $0x20] sm:$0xff] %vm242_vm2, %v2143_v44  ;;  %s2146_s26 = smov 96   ;;  %vm452_vm4 = vcmask 781824   ;;  %vm485_vm5 = vcmask 1044224   ;;  %vm2148_vm6 = vmmov 0  }
  0x13   :  { %vm1574_vm7 = vcmask 523264   ;;  %vm1632_vm8 = vcmask 785408   ;;  %s2149_s10 = smov [#allocation10]   ;;  %vm1676_vm9 = vcmask 58368  }
  0x14   :  { %s1684_s11 = sshll.u32 %s2149_s10, 4  ;;  %s1685_s11 = int_to_ptr.vmem [resolvable:$true] %s1684_s11 }
  0x15   :  { %2013 = vmatpush3.bf16.msra.mxu1 %v2059_v6  ;;  %p2126_p1 = scmp.lt.s32.totalorder %s1685_s11, %s1685_s11 }
  0x16   :  { %2022 = vmatprep.subr.bf16.mxu1 %v2064_v47 }
  0x18   :  { %v346_v45 = vld [vmem:[#allocation3 + $0x40] ss:$2 sm:$0xff]  ;;  %v361_v46 = vld [vmem:[#allocation3 + $0x41] ss:$2 sm:$0xff] }
  0x19   :  { %351 = vst.msk [vmem:[#allocation4 + $0x20] sm:$0xff] %vm242_vm2, %v346_v45  ;;  %366 = vst.msk [vmem:[#allocation5 + $0x20] sm:$0xff] %vm242_vm2, %v361_v46 }
  0xc6   :  { %v2004_v8 = vpop.f32.mrf.mxu0 }
  0xc7   :  { %v123_v9 = vadd.f32 %v2004_v8, %v1692_v7 }
  0xc8   :  { %v114_v10 = vpop.f32.mrf.mxu0 }
  0xc9   :  { %v147_v11 = vmax.f32 %v123_v9, 0.0  ;;  %v115_v12 = vadd.f32 %v1692_v7, %v114_v10 }
  0xca   :  { %v2005_v13 = vpop.f32.mrf.mxu0 }
  0xcb   :  { %v1868_v14 = vpack.c.bf16 %v147_v11, %v147_v11  ;;  %v145_v15 = vmax.f32 %v115_v12, 0.0  ;;  %v126_v16 = vadd.f32 %v2005_v13, %v1692_v7 }
  0xcc   :  { %v117_v17 = vpop.f32.mrf.mxu0 }
  0xcd   :  { %188 = vst.msk [vmem:[#allocation2 + $0x8] sm:$0xf] %vm185_vm1, %v1868_v14  ;;  %v1866_v18 = vpack.c.bf16 %v145_v15, %v145_v15  ;;  %v148_v19 = vmax.f32 %v126_v16, 0.0  ;;  %v118_v20 = vadd.f32 %v1692_v7, %v117_v17 }
  0xce   :  { %v2008_v21 = vpop.f32.mrf.mxu0 }
  0xcf   :  { %186 = vst.msk [vmem:[#allocation2] sm:$0xf] %vm185_vm1, %v1866_v18  ;;  %v1869_v22 = vpack.c.bf16 %v148_v19, %v148_v19  ;;  %v146_v23 = vmax.f32 %v118_v20, 0.0  ;;  %v139_v24 = vadd.f32 %v2008_v21, %v1692_v7 }
  0xd0   :  { %v130_v25 = vpop.f32.mrf.mxu0 }
  0xd1   :  { %189 = vst.msk [vmem:[#allocation2 + $0xc] sm:$0xf] %vm185_vm1, %v1869_v22  ;;  %v1867_v26 = vpack.c.bf16 %v146_v23, %v146_v23  ;;  %v151_v27 = vmax.f32 %v139_v24, 0.0  ;;  %v131_v28 = vadd.f32 %v1692_v7, %v130_v25 }
  0xd2   :  { %v2009_v29 = vpop.f32.mrf.mxu0 }
  0xd3   :  { %187 = vst.msk [vmem:[#allocation2 + $0x4] sm:$0xf] %vm185_vm1, %v1867_v26  ;;  %v1872_v30 = vpack.c.bf16 %v151_v27, %v151_v27  ;;  %v149_v31 = vmax.f32 %v131_v28, 0.0  ;;  %v142_v32 = vadd.f32 %v2009_v29, %v1692_v7 }
  0xd4   :  { %v133_v33 = vpop.f32.mrf.mxu0 }
  0xd5   :  { %192 = vst.msk [vmem:[#allocation2 + $0x18] sm:$0xf] %vm185_vm1, %v1872_v30  ;;  %v1870_v34 = vpack.c.bf16 %v149_v31, %v149_v31  ;;  %v152_v35 = vmax.f32 %v142_v32, 0.0  ;;  %v134_v36 = vadd.f32 %v1692_v7, %v133_v33  ;;  %v2068_v31 = vld [vmem:[%s2563_s1 + $0x90] sm:$0xff]  }
  0xd6   :  { %1961 = vmatprep.subr.bf16.mxu0 %v2068_v31 }
  0xd7   :  { %190 = vst.msk [vmem:[#allocation2 + $0x10] sm:$0xf] %vm185_vm1, %v1870_v34  ;;  %v1873_v37 = vpack.c.bf16 %v152_v35, %v152_v35  ;;  %v150_v38 = vmax.f32 %v134_v36, 0.0  ;;  %v2069_v34 = vld [vmem:[%s2563_s1 + $0x50] sm:$0xff]  }
  0xd8   :  { %v2061_v41 = vld [vmem:[#allocation2 + $0x8] sm:$0xff]   ;;  %1962 = vmatpush3.bf16.msra.mxu0 %v2069_v34  ;;  %v2082_v34 = vld [vmem:[%s2563_s1 + $0x58] sm:$0xff]  }
  0xd9   :  { %193 = vst.msk [vmem:[#allocation2 + $0x1c] sm:$0xf] %vm185_vm1, %v1873_v37  ;;  %v1871_v39 = vpack.c.bf16 %v150_v38, %v150_v38 }
  0xda   :  { %v2060_v40 = vld [vmem:[#allocation2] sm:$0xff]  }
  0xdb   :  { %191 = vst.msk [vmem:[#allocation2 + $0x14] sm:$0xf] %vm185_vm1, %v1871_v39  ;;  %2014 = vmatprep.mubr.msk.bf16.mxu1 %vm242_vm2, %v2060_v40 }
  0xdc   :  { %2015 = vmatmul.mubr.msk.bf16.vlgmr.msra.gmra.mxu1 %vm242_vm2, %v2061_v41 }
  0xdd   :  { %2023 = vmatpush3.bf16.msra.mxu1 %v2064_v47 }
  0xde   :  { %2024 = vmatprep.subr.bf16.mxu1 %v2065_v48 }
  0xe0   :  { %v2063_v43 = vld [vmem:[#allocation2 + $0x18] sm:$0xff]  }
  0xe1   :  { %2025 = vmatpush3.bf16.msra.mxu1 %v2065_v48 }
  0xe2   :  { %v2062_v42 = vld [vmem:[#allocation2 + $0x10] sm:$0xff]  }
  0xe3   :  { %2018 = vmatprep.mubr.msk.bf16.mxu1 %vm242_vm2, %v2062_v42 }
  0xe4   :  { %2019 = vmatmul.mubr.msk.bf16.gmra.mxu1 %vm242_vm2, %v2063_v43 }
 0x19c   :  { %v2016_v50 = vpop.f32.mrf.mxu1 }
 0x19d   :  { %v298_v51 = vadd.f32 %v2016_v50, %v1710_v49 }
 0x19e   :  { %v289_v52 = vpop.f32.mrf.mxu1 }
 0x19f   :  { %v322_v53 = vmax.f32 %v298_v51, 0.0  ;;  %v290_v54 = vadd.f32 %v1710_v49, %v289_v52 }
 0x1a0   :  { %v2017_v55 = vpop.f32.mrf.mxu1 }
 0x1a1   :  { %330 = vst.msk [vmem:[#allocation3 + $0x10] sm:$0xff] %vm242_vm2, %v322_v53  ;;  %v320_v56 = vmax.f32 %v290_v54, 0.0  ;;  %v301_v57 = vadd.f32 %v2017_v55, %v1710_v49 }
 0x1a2   :  { %v292_v58 = vpop.f32.mrf.mxu1 }
 0x1a3   :  { %328 = vst.msk [vmem:[#allocation3] sm:$0xff] %vm242_vm2, %v320_v56  ;;  %v323_v59 = vmax.f32 %v301_v57, 0.0  ;;  %v293_v60 = vadd.f32 %v1710_v49, %v292_v58 }
 0x1a4   :  { %v2020_v61 = vpop.f32.mrf.mxu1 }
 0x1a5   :  { %331 = vst.msk [vmem:[#allocation3 + $0x18] sm:$0xff] %vm242_vm2, %v323_v59  ;;  %v321_v62 = vmax.f32 %v293_v60, 0.0  ;;  %v314_v63 = vadd.f32 %v2020_v61, %v1710_v49  ;;  %v2070_v59 = vld [vmem:[%s2563_s1 + $0x88] sm:$0xff]   ;;  %v2072_v61 = vld [vmem:[%s2563_s1 + $0x80] sm:$0xff]  }
 0x1a6   :  { %v305_v0 = vpop.f32.mrf.mxu1  ;;  %v2071_v60 = vld [vmem:[%s2563_s1 + $0x48] sm:$0xff]   ;;  %1963 = vmatprep.subr.bf16.mxu0 %v2070_v59 }
 0x1a7   :  { %329 = vst.msk [vmem:[#allocation3 + $0x8] sm:$0xff] %vm242_vm2, %v321_v62  ;;  %v326_v1 = vmax.f32 %v314_v63, 0.0  ;;  %v306_v2 = vadd.f32 %v1710_v49, %v305_v0  ;;  %1964 = vmatpush3.bf16.msra.mxu0 %v2071_v60 }
 0x1a8   :  { %v2021_v3 = vpop.f32.mrf.mxu1  ;;  %1965 = vmatprep.subr.bf16.mxu0 %v2072_v61 }
 0x1a9   :  { %334 = vst.msk [vmem:[#allocation3 + $0x30] sm:$0xff] %vm242_vm2, %v326_v1  ;;  %v324_v4 = vmax.f32 %v306_v2, 0.0  ;;  %v317_v5 = vadd.f32 %v2021_v3, %v1710_v49 }
 0x1aa   :  { %v308_v6 = vpop.f32.mrf.mxu1 }
 0x1ab   :  { %332 = vst.msk [vmem:[#allocation3 + $0x20] sm:$0xff] %vm242_vm2, %v324_v4  ;;  %v327_v7 = vmax.f32 %v317_v5, 0.0  ;;  %v309_v8 = vadd.f32 %v1710_v49, %v308_v6  ;;  %v2073_v5 = vld [vmem:[%s2563_s1 + $0x40] sm:$0xff]  }
 0x1ac   :  { %v355_v9 = vld [vmem:[#allocation3 + $0x11] ss:$2 sm:$0xff]  ;;  %v340_v10 = vld [vmem:[#allocation3 + $0x10] ss:$2 sm:$0xff]  ;;  %1966 = vmatpush3.bf16.msra.mxu0 %v2073_v5 }
 0x1ad   :  { %335 = vst.msk [vmem:[#allocation3 + $0x38] sm:$0xff] %vm242_vm2, %v327_v7  ;;  %v325_v11 = vmax.f32 %v309_v8, 0.0  ;;  %363 = vst.msk [vmem:[#allocation5 + $0x8] sm:$0xff] %vm242_vm2, %v355_v9 }
 0x1ae   :  { %348 = vst.msk [vmem:[#allocation4 + $0x8] sm:$0xff] %vm242_vm2, %v340_v10  ;;  %v353_v12 = vld [vmem:[#allocation3 + $0x1] ss:$2 sm:$0xff]  ;;  %v338_v13 = vld [vmem:[#allocation3] ss:$2 sm:$0xff]  ;;  %v2074_v10 = vld [vmem:[%s2563_s1 + $0x78] sm:$0xff]  }
 0x1af   :  { %362 = vst.msk [vmem:[#allocation5] sm:$0xff] %vm242_vm2, %v353_v12  ;;  %333 = vst.msk [vmem:[#allocation3 + $0x28] sm:$0xff] %vm242_vm2, %v325_v11  ;;  %1967 = vmatprep.subr.bf16.mxu0 %v2074_v10 }
 0x1b0   :  { %347 = vst.msk [vmem:[#allocation4] sm:$0xff] %vm242_vm2, %v338_v13 }
 0x1b4   :  { %v344_v14 = vld [vmem:[#allocation3 + $0x30] ss:$2 sm:$0xff]  ;;  %v359_v15 = vld [vmem:[#allocation3 + $0x31] ss:$2 sm:$0xff]  ;;  %v515_v16 = vld [vmem:[#allocation5 + $0x8] sm:$0xff] }
 0x1b5   :  { %350 = vst.msk [vmem:[#allocation4 + $0x18] sm:$0xff] %vm242_vm2, %v344_v14  ;;  %365 = vst.msk [vmem:[#allocation5 + $0x18] sm:$0xff] %vm242_vm2, %v359_v15  ;;  %v1895_v17 = vpack.c.bf16 %v515_v16, %v515_v16  ;;  %v368_v18 = vld [vmem:[#allocation4 + $0x8] sm:$0xff]  ;;  %v2076_v16 = vld [vmem:[%s2563_s1 + $0x70] sm:$0xff]  }
 0x1b6   :  { %v342_v19 = vld [vmem:[#allocation3 + $0x20] ss:$2 sm:$0xff]  ;;  %v357_v20 = vld [vmem:[#allocation3 + $0x21] ss:$2 sm:$0xff]  ;;  %v1875_v22 = vpack.c.bf16 %v368_v18, %v368_v18  ;;  %v514_v24 = vld [vmem:[#allocation5] sm:$0xff] }
 0x1b7   :  { %v391_v21 = vld [vmem:[#allocation4 + $0x1] sm:$0xff]  ;;  %349 = vst.msk [vmem:[#allocation4 + $0x10] sm:$0xff] %vm242_vm2, %v342_v19  ;;  %364 = vst.msk [vmem:[#allocation5 + $0x10] sm:$0xff] %vm242_vm2, %v357_v20  ;;  %532 = vrot.lane.b32.xlu1 %v1895_v17, %s2144_s14  ;;  %v610_v26 = vld [vmem:[#allocation5 + $0x3] sm:$0xff]  ;;  %v1894_v27 = vpack.c.bf16 %v514_v24, %v514_v24 }
 0x1b8   :  { %v1878_v23 = vpack.c.bf16 %v391_v21, %v391_v21  ;;  %v424_v25 = vld [vmem:[#allocation4 + $0x2] sm:$0xff]  ;;  %388 = vst.msk [vmem:[#allocation6 + $0xc] sm:$0xf] %vm185_vm1, %v1875_v22  ;;  %v1906_v28 = vpack.c.bf16 %v610_v26, %v610_v26  ;;  %v578_v51 = vld [vmem:[#allocation5 + $0x2] sm:$0xff]  ;;  %v2078_v22 = vld [vmem:[%s2563_s1 + $0x68] sm:$0xff]  }
 0x1b9   :  { %v367_v29 = vld [vmem:[#allocation4] sm:$0xff]  ;;  %v1882_v35 = vpack.c.bf16 %v424_v25, %v424_v25  ;;  %v546_v37 = vld [vmem:[#allocation5 + $0x1] sm:$0xff]  ;;  %v1902_v3 = vpack.c.bf16 %v578_v51, %v578_v51  ;;  %v2079_v26 = vld [vmem:[%s2563_s1 + $0x28] sm:$0xff]  }
 0x1ba   :  { %407 = vrot.lane.b32.xlu0 %v1878_v23, %s2144_s14  ;;  %v490_v30 = vld [vmem:[#allocation4 + $0x4] sm:$0xff]  ;;  %v1874_v32 = vpack.c.bf16 %v367_v29, %v367_v29  ;;  %630 = vst.msk [vmem:[#allocation6 + $0x8] sm:$0xf] %vm185_vm1, %v1906_v28  ;;  %v1898_v45 = vpack.c.bf16 %v546_v37, %v546_v37  ;;  %v2080_v28 = vld [vmem:[%s2563_s1 + $0x60] sm:$0xff]  }
 0x1bb   :  { %v1890_v33 = vpack.c.bf16 %v490_v30, %v490_v30  ;;  %530 = vrot.lane.b32.xlu1 %v1894_v27, %s2144_s14  ;;  %v457_v48 = vld [vmem:[#allocation4 + $0x3] sm:$0xff] }
 0x1bc   :  { %v394_v36 = vld [vmem:[#allocation4 + $0x19] sm:$0xff]  ;;  %387 = vst.msk [vmem:[#allocation6] sm:$0xf] %vm185_vm1, %v1874_v32  ;;  %v613_v39 = vld [vmem:[#allocation5 + $0x1b] sm:$0xff]  ;;  %v1886_v52 = vpack.c.bf16 %v457_v48, %v457_v48  ;;  %v2081_v32 = vld [vmem:[%s2563_s1 + $0x20] sm:$0xff]  }
 0x1bd   :  { %510 = vst.msk [vmem:[#allocation6 + $0x4] sm:$0xf] %vm185_vm1, %v1890_v33  ;;  %v1881_v38 = vpack.c.bf16 %v394_v36, %v394_v36  ;;  %v517_v40 = vld [vmem:[#allocation5 + $0x18] sm:$0xff]  ;;  %v1909_v43 = vpack.c.bf16 %v613_v39, %v613_v39  ;;  %v370_v54 = vld [vmem:[#allocation4 + $0x18] sm:$0xff]  ;;  %v2075_v14 = vld [vmem:[%s2563_s1 + $0x38] sm:$0xff]  }
 0x1be   :  { %440 = vrot.lane.b32.xlu0 %v1882_v35, %s2145_s19  ;;  %v611_v41 = vld [vmem:[#allocation5 + $0xb] sm:$0xff]  ;;  %v612_v42 = vld [vmem:[#allocation5 + $0x13] sm:$0xff]  ;;  %v1897_v49 = vpack.c.bf16 %v517_v40, %v517_v40  ;;  %v1877_v57 = vpack.c.bf16 %v370_v54, %v370_v54  ;;  %v392_v4 = vld [vmem:[#allocation4 + $0x9] sm:$0xff]  ;;  %1968 = vmatpush3.bf16.msra.mxu0 %v2075_v14 }
 0x1bf   :  { %413 = vrot.lane.b32.xlu1 %v1881_v38, %s2144_s14  ;;  %v1907_v46 = vpack.c.bf16 %v611_v41, %v611_v41  ;;  %v1908_v47 = vpack.c.bf16 %v612_v42, %v612_v42  ;;  %633 = vst.msk [vmem:[#allocation6 + $0x2c] sm:$0xf] %vm185_vm1, %v1909_v43  ;;  %v427_v50 = vld [vmem:[#allocation4 + $0x1a] sm:$0xff]  ;;  %v491_v53 = vld [vmem:[#allocation4 + $0xc] sm:$0xff]  ;;  %v1879_v12 = vpack.c.bf16 %v392_v4, %v392_v4  ;;  %v581_v40 = vld [vmem:[#allocation5 + $0x1a] sm:$0xff] }
 0x1c0   :  { %v493_v55 = vld [vmem:[#allocation4 + $0x1c] sm:$0xff]  ;;  %v1891_v56 = vpack.c.bf16 %v491_v53, %v491_v53  ;;  %v1885_v62 = vpack.c.bf16 %v427_v50, %v427_v50  ;;  %v369_v63 = vld [vmem:[#allocation4 + $0x10] sm:$0xff]  ;;  %390 = vst.msk [vmem:[#allocation6 + $0x24] sm:$0xf] %vm185_vm1, %v1877_v57  ;;  %1969 = vmatprep.subr.bf16.mxu0 %v2076_v16  ;;  %v2083_v38 = vld [vmem:[%s2563_s1 + $0x18] sm:$0xff]   ;;  %v1905_v43 = vpack.c.bf16 %v581_v40, %v581_v40 }
 0x1c1   :  { %631 = vst.msk [vmem:[#allocation6 + $0x14] sm:$0xf] %vm185_vm1, %v1907_v46  ;;  %632 = vst.msk [vmem:[#allocation6 + $0x20] sm:$0xf] %vm185_vm1, %v1908_v47  ;;  %v1893_v58 = vpack.c.bf16 %v493_v55, %v493_v55  ;;  %v549_v0 = vld [vmem:[#allocation5 + $0x19] sm:$0xff]  ;;  %v1876_v1 = vpack.c.bf16 %v369_v63, %v369_v63  ;;  %v492_v2 = vld [vmem:[#allocation4 + $0x14] sm:$0xff] }
 0x1c2   :  { %562 = vrot.lane.b32.xlu0 %v1898_v45, %s2145_s19  ;;  %511 = vst.msk [vmem:[#allocation6 + $0x10] sm:$0xf] %vm185_vm1, %v1891_v56  ;;  %v1892_v6 = vpack.c.bf16 %v492_v2, %v492_v2  ;;  %v1901_v8 = vpack.c.bf16 %v549_v0, %v549_v0  ;;  %v425_v11 = vld [vmem:[#allocation4 + $0xa] sm:$0xff]  ;;  %v516_v19 = vld [vmem:[#allocation5 + $0x10] sm:$0xff]  ;;  %v2077_v20 = vld [vmem:[%s2563_s1 + $0x30] sm:$0xff]  }
 0x1c3   :  { %536 = vrot.lane.b32.xlu1 %v1897_v49, %s2144_s14  ;;  %513 = vst.msk [vmem:[#allocation6 + $0x28] sm:$0xf] %vm185_vm1, %v1893_v58  ;;  %389 = vst.msk [vmem:[#allocation6 + $0x18] sm:$0xf] %vm185_vm1, %v1876_v1  ;;  %v393_v13 = vld [vmem:[#allocation4 + $0x11] sm:$0xff]  ;;  %v1883_v15 = vpack.c.bf16 %v425_v11, %v425_v11  ;;  %v1896_v24 = vpack.c.bf16 %v516_v19, %v516_v19  ;;  %1970 = vmatpush3.bf16.msra.mxu0 %v2077_v20  ;;  %v548_v31 = vld [vmem:[#allocation5 + $0x11] sm:$0xff] }
 0x1c4   :  { %512 = vst.msk [vmem:[#allocation6 + $0x1c] sm:$0xf] %vm185_vm1, %v1892_v6  ;;  %v547_v17 = vld [vmem:[#allocation5 + $0x9] sm:$0xff]  ;;  %v1880_v18 = vpack.c.bf16 %v393_v13, %v393_v13  ;;  %1971 = vmatprep.subr.bf16.mxu0 %v2078_v22  ;;  %v460_v35 = vld [vmem:[#allocation4 + $0x1b] sm:$0xff]  ;;  %v1900_v36 = vpack.c.bf16 %v548_v31, %v548_v31  ;;  %v2085_v16 = vld [vmem:[%s2563_s1 + $0xd8] sm:$0xff]  }
 0x1c5   :  { %v1899_v21 = vpack.c.bf16 %v547_v17, %v547_v17  ;;  %v458_v23 = vld [vmem:[#allocation4 + $0xb] sm:$0xff]  ;;  %v459_v37 = vld [vmem:[#allocation4 + $0x13] sm:$0xff]  ;;  %v1889_v39 = vpack.c.bf16 %v460_v35, %v460_v35  ;;  %v2086_v17 = vld [vmem:[%s2563_s1 + $0xd0] sm:$0xff]  }
 0x1c6   :  { %473 = vrot.lane.b32.xlu0 %v1886_v52, %s2146_s26  ;;  %v426_v25 = vld [vmem:[#allocation4 + $0x12] sm:$0xff]  ;;  %v1887_v27 = vpack.c.bf16 %v458_v23, %v458_v23  ;;  %v1888_v41 = vpack.c.bf16 %v459_v37, %v459_v37  ;;  %v580_v42 = vld [vmem:[#allocation5 + $0x12] sm:$0xff] }
 0x1c7   :  { %446 = vrot.lane.b32.xlu1 %v1885_v62, %s2145_s19  ;;  %v579_v29 = vld [vmem:[#allocation5 + $0xa] sm:$0xff]  ;;  %v1884_v30 = vpack.c.bf16 %v426_v25, %v426_v25  ;;  %1972 = vmatpush3.bf16.msra.mxu0 %v2079_v26  ;;  %v1904_v45 = vpack.c.bf16 %v580_v42, %v580_v42 }
 0x1c8   :  { %v2066_v7 = vld [vmem:[#allocation6 + $0x8] ss:$12 sps:$4 sm:$0xff]   ;;  %v2067_v9 = vld [vmem:[#allocation6 + $0x20] ss:$12 sps:$4 sm:$0xff]   ;;  %v1903_v33 = vpack.c.bf16 %v579_v29, %v579_v29  ;;  %1973 = vmatprep.subr.bf16.mxu0 %v2080_v28 }
 0x1c9   :  { %2026 = vmatprep.mubr.msk.bf16.mxu1 %vm242_vm2, %v2066_v7  ;;  %v2084_v14 = vld [vmem:[%s2563_s1 + $0xe0] sm:$0xff]  }
 0x1ca   :  { %594 = vrot.lane.b32.xlu0 %v1902_v3, %s2146_s26  ;;  %2027 = vmatmul.mubr.msk.bf16.vlgmr.msra.gmra.mxu1 %vm242_vm2, %v2067_v9  ;;  %v1757_v22 = vld [vmem:[%s2564_s2 + $0x2] ss:$0 sm:$0xff] }
 0x1cb   :  { %568 = vrot.lane.b32.xlu1 %v1901_v8, %s2145_s19  ;;  %1974 = vmatpush3.bf16.msra.mxu0 %v2081_v32  ;;  %v2088_v37 = vld [vmem:[%s2563_s1 + $0xc0] sm:$0xff]  }
 0x1cc   :  { %1975 = vmatprep.subr.bf16.mxu0 %v2082_v34 }
 0x1ce   :  { %409 = vrot.lane.b32.xlu0 %v1879_v12, %s2144_s14 }
 0x1cf   :  { %442 = vrot.lane.b32.xlu1 %v1883_v15, %s2145_s19  ;;  %1976 = vmatpush3.bf16.msra.mxu0 %v2083_v38  ;;  %v2147_v15 = vmov 0  }
 0x1d0   :  { %1189 = vmatprep.subr.bf16.mxu1 %v2147_v15  ;;  %1503 = vmatprep.subr.bf16.mxu0 %v2147_v15 }
 0x1d1   :  { %1190 = vmatpush1.bf16.msra.mxu1 %v2084_v14 }
 0x1d2   :  { %411 = vrot.lane.b32.xlu0 %v1880_v18, %s2144_s14  ;;  %1191 = vmatprep.subr.bf16.mxu1 %v2147_v15  ;;  %v2087_v18 = vld [vmem:[%s2563_s1 + $0xc8] sm:$0xff]  }
 0x1d3   :  { %564 = vrot.lane.b32.xlu1 %v1899_v21, %s2145_s19 }
 0x1d5   :  { %1192 = vmatpush1.bf16.msra.mxu1 %v2085_v16  ;;  %v2093_v16 = vld [vmem:[%s2563_s1 + $0xe8] sm:$0xff]  }
 0x1d6   :  { %534 = vrot.lane.b32.xlu0 %v1896_v24, %s2144_s14  ;;  %1193 = vmatprep.subr.bf16.mxu1 %v2147_v15 }
 0x1d7   :  { %475 = vrot.lane.b32.xlu1 %v1887_v27, %s2146_s26 }
 0x1d9   :  { %1194 = vmatpush1.bf16.msra.mxu1 %v2086_v17 }
 0x1da   :  { %444 = vrot.lane.b32.xlu0 %v1884_v30, %s2145_s19  ;;  %1195 = vmatprep.subr.bf16.mxu1 %v2147_v15 }
 0x1db   :  { %596 = vrot.lane.b32.xlu1 %v1903_v33, %s2146_s26 }
 0x1dd   :  { %1196 = vmatpush1.bf16.msra.mxu1 %v2087_v18 }
 0x1de   :  { %566 = vrot.lane.b32.xlu0 %v1900_v36, %s2145_s19  ;;  %1197 = vmatprep.subr.bf16.mxu1 %v2147_v15 }
 0x1df   :  { %479 = vrot.lane.b32.xlu1 %v1889_v39, %s2146_s26 }
 0x1e1   :  { %1198 = vmatpush1.bf16.msra.mxu1 %v2088_v37 }
 0x1e2   :  { %477 = vrot.lane.b32.xlu0 %v1888_v41, %s2146_s26  ;;  %1199 = vmatprep.subr.bf16.mxu1 %v2147_v15 }
 0x1e3   :  { %600 = vrot.lane.b32.xlu1 %v1905_v43, %s2146_s26 }
 0x1e6   :  { %598 = vrot.lane.b32.xlu0 %v1904_v45, %s2146_s26 }
 0x229   :  { %v533_v46 = vpop.permute.xlu1 %532 }
 0x22a   :  { %543 = vst.msk [vmem:[#allocation6 + $0x10] sm:$0xf] %vm419_vm3, %v533_v46 }
 0x22c   :  { %v408_v47 = vpop.permute.xlu0 %407 }
 0x22d   :  { %420 = vst.msk [vmem:[#allocation6] sm:$0xf] %vm419_vm3, %v408_v47  ;;  %v531_v48 = vpop.permute.xlu1 %530  ;;  %v2089_v47 = vld [vmem:[%s2563_s1 + $0xb8] sm:$0xff]  }
 0x22e   :  { %542 = vst.msk [vmem:[#allocation6 + $0x4] sm:$0xf] %vm419_vm3, %v531_v48  ;;  %1200 = vmatpush1.bf16.msra.mxu1 %v2089_v47 }
 0x22f   :  { %1201 = vmatprep.subr.bf16.mxu1 %v2147_v15 }
 0x230   :  { %v441_v49 = vpop.permute.xlu0 %440 }
 0x231   :  { %453 = vst.msk [vmem:[#allocation6] sm:$0xf] %vm452_vm4, %v441_v49  ;;  %v414_v50 = vpop.permute.xlu1 %413 }
 0x232   :  { %423 = vst.msk [vmem:[#allocation6 + $0x24] sm:$0xf] %vm419_vm3, %v414_v50 }
 0x234   :  { %v563_v51 = vpop.permute.xlu0 %562 }
 0x235   :  { %574 = vst.msk [vmem:[#allocation6 + $0x4] sm:$0xf] %vm452_vm4, %v563_v51  ;;  %v537_v52 = vpop.permute.xlu1 %536 }
 0x236   :  { %545 = vst.msk [vmem:[#allocation6 + $0x28] sm:$0xf] %vm419_vm3, %v537_v52 }
 0x238   :  { %v474_v53 = vpop.permute.xlu0 %473 }
 0x239   :  { %486 = vst.msk [vmem:[#allocation6] sm:$0xf] %vm485_vm5, %v474_v53  ;;  %v447_v54 = vpop.permute.xlu1 %446 }
 0x23a   :  { %456 = vst.msk [vmem:[#allocation6 + $0x24] sm:$0xf] %vm452_vm4, %v447_v54 }
 0x23c   :  { %v595_v55 = vpop.permute.xlu0 %594 }
 0x23d   :  { %606 = vst.msk [vmem:[#allocation6 + $0x4] sm:$0xf] %vm485_vm5, %v595_v55  ;;  %v569_v56 = vpop.permute.xlu1 %568 }
 0x23e   :  { %577 = vst.msk [vmem:[#allocation6 + $0x28] sm:$0xf] %vm452_vm4, %v569_v56 }
 0x240   :  { %v410_v57 = vpop.permute.xlu0 %409 }
 0x241   :  { %421 = vst.msk [vmem:[#allocation6 + $0xc] sm:$0xf] %vm419_vm3, %v410_v57  ;;  %v443_v58 = vpop.permute.xlu1 %442 }
 0x242   :  { %454 = vst.msk [vmem:[#allocation6 + $0xc] sm:$0xf] %vm452_vm4, %v443_v58  ;;  %v2090_v58 = vld [vmem:[%s2563_s1 + $0xb0] sm:$0xff]  }
 0x243   :  { %1202 = vmatpush1.bf16.msra.mxu1 %v2090_v58 }
 0x244   :  { %v412_v59 = vpop.permute.xlu0 %411  ;;  %v634_v4 = vld [vmem:[#allocation6] sm:$0xff]  ;;  %1203 = vmatprep.subr.bf16.mxu1 %v2147_v15 }
 0x245   :  { %422 = vst.msk [vmem:[#allocation6 + $0x18] sm:$0xf] %vm419_vm3, %v412_v59  ;;  %v565_v60 = vpop.permute.xlu1 %564 }
 0x246   :  { %575 = vst.msk [vmem:[#allocation6 + $0x10] sm:$0xf] %vm452_vm4, %v565_v60 }
 0x248   :  { %v535_v61 = vpop.permute.xlu0 %534 }
 0x249   :  { %544 = vst.msk [vmem:[#allocation6 + $0x1c] sm:$0xf] %vm419_vm3, %v535_v61  ;;  %v476_v62 = vpop.permute.xlu1 %475  ;;  %v2091_v61 = vld [vmem:[%s2563_s1 + $0xa8] sm:$0xff]  }
 0x24a   :  { %487 = vst.msk [vmem:[#allocation6 + $0xc] sm:$0xf] %vm485_vm5, %v476_v62  ;;  %1204 = vmatpush1.bf16.msra.mxu1 %v2091_v61 }
 0x24b   :  { %1217 = vmatprep.subr.bf16.mxu1 %v2147_v15 }
 0x24c   :  { %v445_v63 = vpop.permute.xlu0 %444 }
 0x24d   :  { %455 = vst.msk [vmem:[#allocation6 + $0x18] sm:$0xf] %vm452_vm4, %v445_v63  ;;  %v597_v0 = vpop.permute.xlu1 %596 }
 0x24e   :  { %607 = vst.msk [vmem:[#allocation6 + $0x10] sm:$0xf] %vm485_vm5, %v597_v0 }
 0x250   :  { %v567_v1 = vpop.permute.xlu0 %566 }
 0x251   :  { %576 = vst.msk [vmem:[#allocation6 + $0x1c] sm:$0xf] %vm452_vm4, %v567_v1  ;;  %v480_v2 = vpop.permute.xlu1 %479 }
 0x252   :  { %489 = vst.msk [vmem:[#allocation6 + $0x24] sm:$0xf] %vm485_vm5, %v480_v2 }
 0x254   :  { %v478_v3 = vpop.permute.xlu0 %477 }
 0x255   :  { %488 = vst.msk [vmem:[#allocation6 + $0x18] sm:$0xf] %vm485_vm5, %v478_v3  ;;  %v636_v5 = vld [vmem:[#allocation6 + $0xc] sm:$0xff]  ;;  %v601_v6 = vpop.permute.xlu1 %600 }
 0x256   :  { %609 = vst.msk [vmem:[#allocation6 + $0x28] sm:$0xf] %vm485_vm5, %v601_v6  ;;  %v1759_v7 = vcombine.high %v634_v4, %v636_v5  ;;  %v1758_v8 = vcombine.low %v634_v4, %v636_v5 }
 0x258   :  { %v599_v9 = vpop.permute.xlu0 %598  ;;  %858 = vmatprep.mubr.bf16.mxu0 %v1759_v7  ;;  %v2092_v7 = vld [vmem:[%s2563_s1 + $0xf0] sm:$0xff]  }
 0x259   :  { %608 = vst.msk [vmem:[#allocation6 + $0x1c] sm:$0xf] %vm485_vm5, %v599_v9  ;;  %859 = vmatmul.mubr.bf16.vlgmr.msra.gmra.mxu0 %v1758_v8  ;;  %1218 = vmatpush2.bf16.msra.mxu1 %v2092_v7 }
 0x25a   :  { %1219 = vmatprep.subr.bf16.mxu1 %v2147_v15 }
 0x25d   :  { %v640_v10 = vld [vmem:[#allocation6 + $0x24] sm:$0xff]  ;;  %1220 = vmatpush2.bf16.msra.mxu1 %v2093_v16 }
 0x25e   :  { %2030 = vmatprep.subr.bf16.mxu1 %v2143_v44 }
 0x260   :  { %v638_v11 = vld [vmem:[#allocation6 + $0x18] sm:$0xff] }
 0x261   :  { %v1762_v12 = vcombine.high %v638_v11, %v640_v10  ;;  %v1761_v13 = vcombine.low %v638_v11, %v640_v10 }
 0x263   :  { %866 = vmatprep.mubr.bf16.mxu0 %v1762_v12 }
 0x264   :  { %867 = vmatmul.mubr.bf16.gmra.mxu0 %v1761_v13 }
 0x28a   :  { %v2028_v19 = vpop.f32.mrf.mxu1 }
 0x28c   :  { %v909_v21 = vpop.f32.mrf.mxu1 }
 0x28e   :  { %v2029_v27 = vpop.f32.mrf.mxu1 }
 0x290   :  { %v912_v33 = vpop.f32.mrf.mxu1 }
 0x319   :  { %v1977_v20 = vpop.f32.mrf.mxu0 }
 0x31b   :  { %v1978_v23 = vpop.f32.mrf.mxu0 }
 0x31c   :  { %v1979_v24 = vadd.f32 %v1978_v23, %v1977_v20 }
 0x31d   :  { %v1980_v25 = vpop.f32.mrf.mxu0 }
 0x31e   :  { %v861_v26 = vadd.f32 %v1979_v24, %v1757_v22 }
 0x31f   :  { %v1981_v28 = vpop.f32.mrf.mxu0 }
 0x320   :  { %v910_v29 = vadd.f32 %v909_v21, %v861_v26  ;;  %v1982_v30 = vadd.f32 %v1981_v28, %v1980_v25 }
 0x322   :  { %v924_v31 = vmax.f32 %v910_v29, 0.0  ;;  %v864_v32 = vadd.f32 %v1982_v30, %v1757_v22 }
 0x324   :  { %v1983_v34 = vpop.f32.mrf.mxu0  ;;  %928 = vst.msk [vmem:[#allocation7] sm:$0xff] %vm242_vm2, %v924_v31  ;;  %v913_v35 = vadd.f32 %v912_v33, %v864_v32 }
 0x326   :  { %v1984_v36 = vpop.f32.mrf.mxu0  ;;  %v925_v38 = vmax.f32 %v913_v35, 0.0 }
 0x327   :  { %v1985_v39 = vadd.f32 %v1984_v36, %v1983_v34 }
 0x328   :  { %v1986_v40 = vpop.f32.mrf.mxu0  ;;  %929 = vst.msk [vmem:[#allocation7 + $0x8] sm:$0xff] %vm242_vm2, %v925_v38 }
 0x329   :  { %v869_v41 = vadd.f32 %v1985_v39, %v1757_v22 }
 0x32a   :  { %v1987_v42 = vpop.f32.mrf.mxu0 }
 0x32b   :  { %v918_v43 = vadd.f32 %v2028_v19, %v869_v41  ;;  %v1988_v45 = vadd.f32 %v1987_v42, %v1986_v40  ;;  %v933_v46 = vld [vmem:[#allocation7] sm:$0xff] }
 0x32c   :  { %v1910_v50 = vpack.c.bf16 %v933_v46, %v933_v46 }
 0x32d   :  { %v926_v48 = vmax.f32 %v918_v43, 0.0  ;;  %v872_v49 = vadd.f32 %v1988_v45, %v1757_v22 }
 0x32e   :  { %953 = vst.msk [vmem:[#allocation6] sm:$0xf] %vm185_vm1, %v1910_v50 }
 0x32f   :  { %930 = vst.msk [vmem:[#allocation7 + $0x10] sm:$0xff] %vm242_vm2, %v926_v48  ;;  %v921_v51 = vadd.f32 %v2029_v27, %v872_v49  ;;  %v1053_v52 = vld [vmem:[#allocation7 + $0x4] sm:$0xff] }
 0x330   :  { %v957_v53 = vld [vmem:[#allocation7 + $0x1] sm:$0xff]  ;;  %v1926_v54 = vpack.c.bf16 %v1053_v52, %v1053_v52  ;;  %v2100_v52 = vld [vmem:[%s2563_s1 + $0x128] sm:$0xff]  }
 0x331   :  { %v927_v55 = vmax.f32 %v921_v51, 0.0  ;;  %v1914_v56 = vpack.c.bf16 %v957_v53, %v957_v53  ;;  %v934_v57 = vld [vmem:[#allocation7 + $0x8] sm:$0xff]  ;;  %v2099_v51 = vld [vmem:[%s2563_s1 + $0x130] sm:$0xff]   ;;  %v2101_v53 = vld [vmem:[%s2563_s1 + $0x120] sm:$0xff]  }
 0x332   :  { %v989_v59 = vld [vmem:[#allocation7 + $0x2] sm:$0xff]  ;;  %v1911_v60 = vpack.c.bf16 %v934_v57, %v934_v57  ;;  %1073 = vst.msk [vmem:[#allocation6 + $0x4] sm:$0xf] %vm185_vm1, %v1926_v54  ;;  %1504 = vmatpush1.bf16.msra.mxu0 %v2099_v51  ;;  %v1804_v54 = vld [vmem:[%s2564_s2 + $0x3] ss:$0 sm:$0xff] }
 0x333   :  { %931 = vst.msk [vmem:[#allocation7 + $0x18] sm:$0xff] %vm242_vm2, %v927_v55  ;;  %973 = vrot.lane.b32.xlu0 %v1914_v56, %s2144_s14  ;;  %v1918_v62 = vpack.c.bf16 %v989_v59, %v989_v59  ;;  %v1021_v1 = vld [vmem:[#allocation7 + $0x3] sm:$0xff]  ;;  %1505 = vmatprep.subr.bf16.mxu0 %v2147_v15 }
 0x334   :  { %954 = vst.msk [vmem:[#allocation6 + $0xc] sm:$0xf] %vm185_vm1, %v1911_v60  ;;  %v1922_v8 = vpack.c.bf16 %v1021_v1, %v1021_v1 }
 0x336   :  { %v1054_v63 = vld [vmem:[#allocation7 + $0xc] sm:$0xff]  ;;  %1506 = vmatpush1.bf16.msra.mxu0 %v2100_v52 }
 0x337   :  { %v958_v0 = vld [vmem:[#allocation7 + $0x9] sm:$0xff]  ;;  %v1927_v2 = vpack.c.bf16 %v1054_v63, %v1054_v63  ;;  %1005 = vrot.lane.b32.xlu0 %v1918_v62, %s2145_s19  ;;  %1507 = vmatprep.subr.bf16.mxu0 %v2147_v15 }
 0x338   :  { %v1915_v3 = vpack.c.bf16 %v958_v0, %v958_v0  ;;  %v935_v4 = vld [vmem:[#allocation7 + $0x10] sm:$0xff]  ;;  %v2102_v62 = vld [vmem:[%s2563_s1 + $0x118] sm:$0xff]   ;;  %v2103_v0 = vld [vmem:[%s2563_s1 + $0x110] sm:$0xff]  }
 0x339   :  { %v990_v5 = vld [vmem:[#allocation7 + $0xa] sm:$0xff]  ;;  %v1912_v6 = vpack.c.bf16 %v935_v4, %v935_v4  ;;  %1074 = vst.msk [vmem:[#allocation6 + $0x10] sm:$0xf] %vm185_vm1, %v1927_v2 }
 0x33a   :  { %975 = vrot.lane.b32.xlu1 %v1915_v3, %s2144_s14  ;;  %v1055_v9 = vld [vmem:[#allocation7 + $0x14] sm:$0xff]  ;;  %v1919_v12 = vpack.c.bf16 %v990_v5, %v990_v5  ;;  %v1022_v13 = vld [vmem:[#allocation7 + $0xb] sm:$0xff]  ;;  %v1056_v19 = vld [vmem:[#allocation7 + $0x1c] sm:$0xff]  ;;  %1508 = vmatpush1.bf16.msra.mxu0 %v2101_v53 }
 0x33b   :  { %v959_v10 = vld [vmem:[#allocation7 + $0x11] sm:$0xff]  ;;  %955 = vst.msk [vmem:[#allocation6 + $0x18] sm:$0xf] %vm185_vm1, %v1912_v6  ;;  %v1928_v11 = vpack.c.bf16 %v1055_v9, %v1055_v9  ;;  %1037 = vrot.lane.b32.xlu0 %v1922_v8, %s2146_s26  ;;  %v1929_v21 = vpack.c.bf16 %v1056_v19, %v1056_v19  ;;  %v1923_v22 = vpack.c.bf16 %v1022_v13, %v1022_v13  ;;  %v960_v23 = vld [vmem:[#allocation7 + $0x19] sm:$0xff] }
 0x33c   :  { %v936_v14 = vld [vmem:[#allocation7 + $0x18] sm:$0xff]  ;;  %v1916_v17 = vpack.c.bf16 %v959_v10, %v959_v10  ;;  %v1917_v26 = vpack.c.bf16 %v960_v23, %v960_v23  ;;  %1509 = vmatprep.subr.bf16.mxu0 %v2147_v15  ;;  %v2105_v19 = vld [vmem:[%s2563_s1 + $0x100] sm:$0xff]   ;;  %v2106_v23 = vld [vmem:[%s2563_s1 + $0xf8] sm:$0xff]  }
 0x33d   :  { %1075 = vst.msk [vmem:[#allocation6 + $0x1c] sm:$0xf] %vm185_vm1, %v1928_v11  ;;  %v1913_v18 = vpack.c.bf16 %v936_v14, %v936_v14  ;;  %v991_v20 = vld [vmem:[#allocation7 + $0x12] sm:$0xff]  ;;  %1076 = vst.msk [vmem:[#allocation6 + $0x28] sm:$0xf] %vm185_vm1, %v1929_v21  ;;  %v992_v27 = vld [vmem:[#allocation7 + $0x1a] sm:$0xff] }
 0x33e   :  { %1007 = vrot.lane.b32.xlu1 %v1919_v12, %s2145_s19  ;;  %v1920_v24 = vpack.c.bf16 %v991_v20, %v991_v20  ;;  %v1023_v25 = vld [vmem:[#allocation7 + $0x13] sm:$0xff]  ;;  %v1921_v29 = vpack.c.bf16 %v992_v27, %v992_v27  ;;  %v1024_v30 = vld [vmem:[#allocation7 + $0x1b] sm:$0xff]  ;;  %1510 = vmatpush1.bf16.msra.mxu0 %v2102_v62 }
 0x33f   :  { %977 = vrot.lane.b32.xlu0 %v1916_v17, %s2144_s14  ;;  %956 = vst.msk [vmem:[#allocation6 + $0x24] sm:$0xf] %vm185_vm1, %v1913_v18  ;;  %v1924_v28 = vpack.c.bf16 %v1023_v25, %v1023_v25  ;;  %v1925_v31 = vpack.c.bf16 %v1024_v30, %v1024_v30  ;;  %1511 = vmatprep.subr.bf16.mxu0 %v2147_v15  ;;  %v2104_v6 = vld [vmem:[%s2563_s1 + $0x108] sm:$0xff]  }
 0x340   :  { %v2094_v46 = vld [vmem:[#allocation6 + $0x4] ss:$12 sps:$4 sm:$0xff]  }
 0x341   :  { %1819 = vmatprep.mubr.msk.bf16.mxu1 %vm242_vm2, %v2094_v46 }
 0x342   :  { %1039 = vrot.lane.b32.xlu1 %v1923_v22, %s2146_s26  ;;  %1512 = vmatpush1.bf16.msra.mxu0 %v2103_v0 }
 0x343   :  { %1009 = vrot.lane.b32.xlu0 %v1920_v24, %s2145_s19  ;;  %1513 = vmatprep.subr.bf16.mxu0 %v2147_v15 }
 0x344   :  { %v2096_v49 = vld [vmem:[#allocation6 + $0x1c] ss:$12 sps:$4 sm:$0xff]  }
 0x346   :  { %979 = vrot.lane.b32.xlu1 %v1917_v26, %s2144_s14  ;;  %1514 = vmatpush1.bf16.msra.mxu0 %v2104_v6 }
 0x347   :  { %1041 = vrot.lane.b32.xlu0 %v1924_v28, %s2146_s26  ;;  %1515 = vmatprep.subr.bf16.mxu0 %v2147_v15 }
 0x34a   :  { %1011 = vrot.lane.b32.xlu1 %v1921_v29, %s2145_s19  ;;  %1516 = vmatpush1.bf16.msra.mxu0 %v2105_v19 }
 0x34b   :  { %1517 = vmatprep.subr.bf16.mxu0 %v2147_v15 }
 0x34e   :  { %1043 = vrot.lane.b32.xlu1 %v1925_v31, %s2146_s26  ;;  %1518 = vmatpush1.bf16.msra.mxu0 %v2106_v23  ;;  %v2120_v23 = vld [vmem:[%s2565_s3] sm:$0xff]  }
 0x34f   :  { %1531 = vmatprep.subr.bf16.mxu0 %v2147_v15 }
 0x3a5   :  { %v974_v32 = vpop.permute.xlu0 %973 }
 0x3a6   :  { %985 = vst.msk [vmem:[#allocation6] sm:$0xf] %vm419_vm3, %v974_v32  ;;  %v2107_v32 = vld [vmem:[%s2563_s1 + $0x140] sm:$0xff]  }
 0x3a7   :  { %1532 = vmatpush2.bf16.msra.mxu0 %v2107_v32 }
 0x3a8   :  { %1533 = vmatprep.subr.bf16.mxu0 %v2147_v15 }
 0x3a9   :  { %v1006_v33 = vpop.permute.xlu0 %1005 }
 0x3aa   :  { %1017 = vst.msk [vmem:[#allocation6] sm:$0xf] %vm452_vm4, %v1006_v33 }
 0x3ac   :  { %v976_v34 = vpop.permute.xlu1 %975 }
 0x3ad   :  { %986 = vst.msk [vmem:[#allocation6 + $0xc] sm:$0xf] %vm419_vm3, %v976_v34  ;;  %v1038_v35 = vpop.permute.xlu0 %1037 }
 0x3ae   :  { %1049 = vst.msk [vmem:[#allocation6] sm:$0xf] %vm485_vm5, %v1038_v35 }
 0x3b0   :  { %v1008_v36 = vpop.permute.xlu1 %1007 }
 0x3b1   :  { %1018 = vst.msk [vmem:[#allocation6 + $0xc] sm:$0xf] %vm452_vm4, %v1008_v36  ;;  %v978_v37 = vpop.permute.xlu0 %977 }
 0x3b2   :  { %987 = vst.msk [vmem:[#allocation6 + $0x18] sm:$0xf] %vm419_vm3, %v978_v37 }
 0x3b4   :  { %v1040_v38 = vpop.permute.xlu1 %1039 }
 0x3b5   :  { %1050 = vst.msk [vmem:[#allocation6 + $0xc] sm:$0xf] %vm485_vm5, %v1040_v38  ;;  %v1010_v39 = vpop.permute.xlu0 %1009  ;;  %v1077_v43 = vld [vmem:[#allocation6] sm:$0xff] }
 0x3b6   :  { %1019 = vst.msk [vmem:[#allocation6 + $0x18] sm:$0xf] %vm452_vm4, %v1010_v39 }
 0x3b8   :  { %v980_v40 = vpop.permute.xlu1 %979 }
 0x3b9   :  { %988 = vst.msk [vmem:[#allocation6 + $0x24] sm:$0xf] %vm419_vm3, %v980_v40  ;;  %v1042_v41 = vpop.permute.xlu0 %1041 }
 0x3ba   :  { %1051 = vst.msk [vmem:[#allocation6 + $0x18] sm:$0xf] %vm485_vm5, %v1042_v41 }
 0x3bc   :  { %v1012_v42 = vpop.permute.xlu1 %1011  ;;  %v1078_v45 = vld [vmem:[#allocation6 + $0xc] sm:$0xff] }
 0x3bd   :  { %1020 = vst.msk [vmem:[#allocation6 + $0x24] sm:$0xf] %vm452_vm4, %v1012_v42  ;;  %v1805_v47 = vcombine.low %v1077_v43, %v1078_v45  ;;  %v2108_v45 = vld [vmem:[%s2563_s1 + $0x138] sm:$0xff]  }
 0x3be   :  { %1534 = vmatpush2.bf16.msra.mxu0 %v2108_v45 }
 0x3bf   :  { %1222 = vmatmul.mubr.bf16.vlgmr.msra.gmra.mxu1 %v1805_v47 }
 0x3c0   :  { %v1044_v48 = vpop.permute.xlu1 %1043  ;;  %1820 = vmatprep.mubr.msk.bf16.mxu1 %vm242_vm2, %v2096_v49 }
 0x3c1   :  { %1052 = vst.msk [vmem:[#allocation6 + $0x24] sm:$0xf] %vm485_vm5, %v1044_v48 }
 0x3c8   :  { %v2098_v50 = vld [vmem:[#allocation6 + $0x18] ss:$12 sps:$4 sm:$0xff]  }
 0x3c9   :  { %1230 = vmatmul.mubr.bf16.gmra.mxu1 %v2098_v50 }
 0x3ca   :  { %2042 = vmatprep.mubr.msk.bf16.mxu1 %vm2148_vm6, %v2143_v44 }
 0x47f   :  { %v1223_v55 = vpop.f32.mrf.mxu1 }
 0x480   :  { %v1224_v56 = vadd.f32 %v1804_v54, %v1223_v55 }
 0x481   :  { %v1225_v57 = vpop.f32.mrf.mxu1 }
 0x482   :  { %v1238_v58 = vmax.f32 %v1224_v56, 0.0 }
 0x483   :  { %v1226_v59 = vpop.f32.mrf.mxu1 }
 0x484   :  { %1242 = vst.msk [vmem:[#allocation8] sm:$0xff] %vm242_vm2, %v1238_v58  ;;  %v1227_v60 = vadd.f32 %v1804_v54, %v1226_v59 }
 0x485   :  { %v1228_v61 = vpop.f32.mrf.mxu1 }
 0x486   :  { %v1239_v63 = vmax.f32 %v1227_v60, 0.0 }
 0x488   :  { %1243 = vst.msk [vmem:[#allocation8 + $0x8] sm:$0xff] %vm242_vm2, %v1239_v63 }
 0x489   :  { %v1231_v1 = vpop.f32.mrf.mxu1 }
 0x48a   :  { %v1232_v3 = vadd.f32 %v1804_v54, %v1231_v1 }
 0x48b   :  { %v1247_v2 = vld [vmem:[#allocation8] sm:$0xff]  ;;  %v1233_v5 = vpop.f32.mrf.mxu1 }
 0x48c   :  { %v1930_v4 = vpack.c.bf16 %v1247_v2, %v1247_v2  ;;  %v1240_v7 = vmax.f32 %v1232_v3, 0.0 }
 0x48d   :  { %v1234_v9 = vpop.f32.mrf.mxu1 }
 0x48e   :  { %1267 = vst.msk [vmem:[#allocation6] sm:$0xf] %vm185_vm1, %v1930_v4  ;;  %v1235_v12 = vadd.f32 %v1804_v54, %v1234_v9  ;;  %v2117_v9 = vld [vmem:[%s2565_s3 + $0x18] sm:$0xff]  }
 0x48f   :  { %v1367_v8 = vld [vmem:[#allocation8 + $0x4] sm:$0xff]  ;;  %1244 = vst.msk [vmem:[#allocation8 + $0x10] sm:$0xff] %vm242_vm2, %v1240_v7  ;;  %v1236_v16 = vpop.f32.mrf.mxu1  ;;  %v2115_v7 = vld [vmem:[%s2565_s3 + $0x28] sm:$0xff]  }
 0x490   :  { %v1271_v10 = vld [vmem:[#allocation8 + $0x1] sm:$0xff]  ;;  %v1946_v11 = vpack.c.bf16 %v1367_v8, %v1367_v8  ;;  %v1241_v20 = vmax.f32 %v1235_v12, 0.0  ;;  %2031 = vmatpush3.bf16.msra.mxu1 %v2115_v7  ;;  %v1841_v12 = vld [vmem:[%s2564_s2 + $0x4] ss:$0 sm:$0xff] }
 0x491   :  { %v1934_v13 = vpack.c.bf16 %v1271_v10, %v1271_v10  ;;  %v1248_v14 = vld [vmem:[#allocation8 + $0x8] sm:$0xff]  ;;  %2032 = vmatprep.subr.bf16.mxu1 %v2143_v44  ;;  %v2118_v10 = vld [vmem:[%s2565_s3 + $0x10] sm:$0xff]  }
 0x492   :  { %v1303_v17 = vld [vmem:[#allocation8 + $0x2] sm:$0xff]  ;;  %v1931_v18 = vpack.c.bf16 %v1248_v14, %v1248_v14  ;;  %1387 = vst.msk [vmem:[#allocation6 + $0x4] sm:$0xf] %vm185_vm1, %v1946_v11  ;;  %v2119_v11 = vld [vmem:[%s2565_s3 + $0x8] sm:$0xff]  }
 0x493   :  { %1287 = vrot.lane.b32.xlu0 %v1934_v13, %s2144_s14  ;;  %1245 = vst.msk [vmem:[#allocation8 + $0x18] sm:$0xff] %vm242_vm2, %v1241_v20  ;;  %v1938_v21 = vpack.c.bf16 %v1303_v17, %v1303_v17  ;;  %v1335_v22 = vld [vmem:[#allocation8 + $0x3] sm:$0xff] }
 0x494   :  { %1268 = vst.msk [vmem:[#allocation6 + $0xc] sm:$0xf] %vm185_vm1, %v1931_v18  ;;  %v1942_v28 = vpack.c.bf16 %v1335_v22, %v1335_v22  ;;  %v2116_v8 = vld [vmem:[%s2565_s3 + $0x20] sm:$0xff]  }
 0x495   :  { %2033 = vmatpush3.bf16.msra.mxu1 %v2116_v8 }
 0x496   :  { %v1368_v24 = vld [vmem:[#allocation8 + $0xc] sm:$0xff]  ;;  %2034 = vmatprep.subr.bf16.mxu1 %v2143_v44 }
 0x497   :  { %1319 = vrot.lane.b32.xlu0 %v1938_v21, %s2145_s19  ;;  %v1272_v25 = vld [vmem:[#allocation8 + $0x9] sm:$0xff]  ;;  %v1947_v26 = vpack.c.bf16 %v1368_v24, %v1368_v24 }
 0x498   :  { %v1935_v27 = vpack.c.bf16 %v1272_v25, %v1272_v25  ;;  %v1249_v29 = vld [vmem:[#allocation8 + $0x10] sm:$0xff] }
 0x499   :  { %v1304_v30 = vld [vmem:[#allocation8 + $0xa] sm:$0xff]  ;;  %v1932_v31 = vpack.c.bf16 %v1249_v29, %v1249_v29  ;;  %1388 = vst.msk [vmem:[#allocation6 + $0x10] sm:$0xf] %vm185_vm1, %v1947_v26  ;;  %2035 = vmatpush3.bf16.msra.mxu1 %v2117_v9 }
 0x49a   :  { %1289 = vrot.lane.b32.xlu1 %v1935_v27, %s2144_s14  ;;  %v1369_v33 = vld [vmem:[#allocation8 + $0x14] sm:$0xff]  ;;  %v1370_v34 = vld [vmem:[#allocation8 + $0x1c] sm:$0xff]  ;;  %v1939_v38 = vpack.c.bf16 %v1304_v30, %v1304_v30  ;;  %v1336_v40 = vld [vmem:[#allocation8 + $0xb] sm:$0xff]  ;;  %2036 = vmatprep.subr.bf16.mxu1 %v2143_v44 }
 0x49b   :  { %1351 = vrot.lane.b32.xlu0 %v1942_v28, %s2146_s26  ;;  %v1273_v35 = vld [vmem:[#allocation8 + $0x11] sm:$0xff]  ;;  %1269 = vst.msk [vmem:[#allocation6 + $0x18] sm:$0xf] %vm185_vm1, %v1932_v31  ;;  %v1948_v36 = vpack.c.bf16 %v1369_v33, %v1369_v33  ;;  %v1949_v37 = vpack.c.bf16 %v1370_v34, %v1370_v34  ;;  %v1943_v46 = vpack.c.bf16 %v1336_v40, %v1336_v40  ;;  %v1274_v15 = vld [vmem:[#allocation8 + $0x19] sm:$0xff]  ;;  %v1858_v34 = vld [vmem:[%s2566_s4] ss:$0 sm:$0xff] }
 0x49c   :  { %v1936_v39 = vpack.c.bf16 %v1273_v35, %v1273_v35  ;;  %v1305_v41 = vld [vmem:[#allocation8 + $0x12] sm:$0xff]  ;;  %v1937_v49 = vpack.c.bf16 %v1274_v15, %v1274_v15  ;;  %v1306_v51 = vld [vmem:[#allocation8 + $0x1a] sm:$0xff] }
 0x49d   :  { %v1250_v42 = vld [vmem:[#allocation8 + $0x18] sm:$0xff]  ;;  %1389 = vst.msk [vmem:[#allocation6 + $0x1c] sm:$0xf] %vm185_vm1, %v1948_v36  ;;  %1390 = vst.msk [vmem:[#allocation6 + $0x28] sm:$0xf] %vm185_vm1, %v1949_v37  ;;  %v1940_v47 = vpack.c.bf16 %v1305_v41, %v1305_v41  ;;  %v1941_v52 = vpack.c.bf16 %v1306_v51, %v1306_v51  ;;  %2037 = vmatpush3.bf16.msra.mxu1 %v2118_v10 }
 0x49e   :  { %1321 = vrot.lane.b32.xlu1 %v1939_v38, %s2145_s19  ;;  %v1933_v43 = vpack.c.bf16 %v1250_v42, %v1250_v42  ;;  %v1337_v48 = vld [vmem:[#allocation8 + $0x13] sm:$0xff]  ;;  %v1338_v53 = vld [vmem:[#allocation8 + $0x1b] sm:$0xff]  ;;  %2038 = vmatprep.subr.bf16.mxu1 %v2143_v44 }
 0x49f   :  { %1291 = vrot.lane.b32.xlu0 %v1936_v39, %s2144_s14  ;;  %v1944_v50 = vpack.c.bf16 %v1337_v48, %v1337_v48  ;;  %v1945_v54 = vpack.c.bf16 %v1338_v53, %v1338_v53 }
 0x4a0   :  { %1270 = vst.msk [vmem:[#allocation6 + $0x24] sm:$0xf] %vm185_vm1, %v1933_v43  ;;  %v2111_v3 = vld [vmem:[#allocation6 + $0x4] ss:$12 sps:$4 sm:$0xff]  }
 0x4a1   :  { %1856 = vmatprep.mubr.msk.bf16.mxu0 %vm242_vm2, %v2111_v3  ;;  %2039 = vmatpush3.bf16.msra.mxu1 %v2119_v11 }
 0x4a2   :  { %1353 = vrot.lane.b32.xlu1 %v1943_v46, %s2146_s26  ;;  %2040 = vmatprep.subr.bf16.mxu1 %v2143_v44 }
 0x4a3   :  { %1323 = vrot.lane.b32.xlu0 %v1940_v47, %s2145_s19 }
 0x4a4   :  { %v2112_v5 = vld [vmem:[#allocation6 + $0x1c] ss:$12 sps:$4 sm:$0xff]  }
 0x4a5   :  { %2041 = vmatpush3.bf16.msra.mxu1 %v2120_v23 }
 0x4a6   :  { %1293 = vrot.lane.b32.xlu1 %v1937_v49, %s2144_s14 }
 0x4a7   :  { %1355 = vrot.lane.b32.xlu0 %v1944_v50, %s2146_s26 }
 0x4aa   :  { %1325 = vrot.lane.b32.xlu1 %v1941_v52, %s2145_s19 }
 0x4ae   :  { %1357 = vrot.lane.b32.xlu1 %v1945_v54, %s2146_s26 }
 0x505   :  { %v1288_v55 = vpop.permute.xlu0 %1287 }
 0x506   :  { %1299 = vst.msk [vmem:[#allocation6] sm:$0xf] %vm419_vm3, %v1288_v55 }
 0x509   :  { %v1320_v56 = vpop.permute.xlu0 %1319 }
 0x50a   :  { %1331 = vst.msk [vmem:[#allocation6] sm:$0xf] %vm452_vm4, %v1320_v56 }
 0x50c   :  { %v1290_v57 = vpop.permute.xlu1 %1289 }
 0x50d   :  { %v1352_v58 = vpop.permute.xlu0 %1351  ;;  %1300 = vst.msk [vmem:[#allocation6 + $0xc] sm:$0xf] %vm419_vm3, %v1290_v57 }
 0x50e   :  { %1363 = vst.msk [vmem:[#allocation6] sm:$0xf] %vm485_vm5, %v1352_v58 }
 0x510   :  { %v1322_v59 = vpop.permute.xlu1 %1321 }
 0x511   :  { %v1292_v60 = vpop.permute.xlu0 %1291  ;;  %1332 = vst.msk [vmem:[#allocation6 + $0xc] sm:$0xf] %vm452_vm4, %v1322_v59 }
 0x512   :  { %1301 = vst.msk [vmem:[#allocation6 + $0x18] sm:$0xf] %vm419_vm3, %v1292_v60 }
 0x514   :  { %v1354_v61 = vpop.permute.xlu1 %1353 }
 0x515   :  { %v1324_v62 = vpop.permute.xlu0 %1323  ;;  %1364 = vst.msk [vmem:[#allocation6 + $0xc] sm:$0xf] %vm485_vm5, %v1354_v61 }
 0x516   :  { %1333 = vst.msk [vmem:[#allocation6 + $0x18] sm:$0xf] %vm452_vm4, %v1324_v62 }
 0x518   :  { %v1294_v63 = vpop.permute.xlu1 %1293 }
 0x519   :  { %v1356_v0 = vpop.permute.xlu0 %1355  ;;  %1302 = vst.msk [vmem:[#allocation6 + $0x24] sm:$0xf] %vm419_vm3, %v1294_v63 }
 0x51a   :  { %1365 = vst.msk [vmem:[#allocation6 + $0x18] sm:$0xf] %vm485_vm5, %v1356_v0 }
 0x51c   :  { %v1326_v1 = vpop.permute.xlu1 %1325  ;;  %v2109_v2 = vld [vmem:[#allocation6] ss:$12 sps:$4 sm:$0xff]  }
 0x51d   :  { %1334 = vst.msk [vmem:[#allocation6 + $0x24] sm:$0xf] %vm452_vm4, %v1326_v1  ;;  %1536 = vmatmul.mubr.bf16.vlgmr.msra.gmra.mxu0 %v2109_v2 }
 0x51e   :  { %1857 = vmatprep.mubr.msk.bf16.mxu0 %vm242_vm2, %v2112_v5 }
 0x520   :  { %v1358_v4 = vpop.permute.xlu1 %1357 }
 0x521   :  { %1366 = vst.msk [vmem:[#allocation6 + $0x24] sm:$0xf] %vm485_vm5, %v1358_v4 }
 0x528   :  { %v2114_v6 = vld [vmem:[#allocation6 + $0x18] ss:$12 sps:$4 sm:$0xff]  }
 0x529   :  { %1544 = vmatmul.mubr.bf16.gmra.mxu0 %v2114_v6 }
 0x5dd   :  { %v1537_v13 = vpop.f32.mrf.mxu0 }
 0x5de   :  { %v1538_v14 = vadd.f32 %v1841_v12, %v1537_v13 }
 0x5df   :  { %v1539_v16 = vpop.f32.mrf.mxu0 }
 0x5e0   :  { %v1552_v17 = vmax.f32 %v1538_v14, 0.0 }
 0x5e1   :  { %v1540_v18 = vpop.f32.mrf.mxu0 }
 0x5e2   :  { %1556 = vst.msk [vmem:[#allocation9] sm:$0xff] %vm242_vm2, %v1552_v17 }
 0x5e3   :  { %v1542_v19 = vpop.f32.mrf.mxu0 }
 0x5e9   :  { %v1545_v20 = vpop.f32.mrf.mxu0 }
 0x5ea   :  { %v1546_v21 = vadd.f32 %v1841_v12, %v1545_v20 }
 0x5eb   :  { %v1547_v22 = vpop.f32.mrf.mxu0 }
 0x5ec   :  { %v1554_v24 = vmax.f32 %v1546_v21, 0.0 }
 0x5ed   :  { %v1548_v25 = vpop.f32.mrf.mxu0 }
 0x5ee   :  { %1558 = vst.msk [vmem:[#allocation9 + $0x10] sm:$0xff] %vm242_vm2, %v1554_v24 }
 0x5ef   :  { %v1550_v26 = vpop.f32.mrf.mxu0 }
 0x5f5   :  { %v1564_v27 = vld [vmem:[#allocation9 + $0x2] ss:$16 sm:$0x3]  ;;  %v1562_v28 = vld [vmem:[#allocation9 + $0x1] ss:$16 sm:$0x3] }
 0x5f6   :  { %1570 = vrot.lane.b32.xlu1 %v1564_v27, %s2145_s19  ;;  %1566 = vrot.lane.b32.xlu0 %v1562_v28, %s2144_s14  ;;  %v1560_v31 = vld [vmem:[#allocation9] ss:$16 sm:$0x3]  ;;  %s2121_s14 = scalar_lea.vmem %s1685_s11, 32 }
 0x5f7   :  { %p2122_p0 = scmp.ne.s32.totalorder %s1685_s11, %s2121_s14  ;;  %p2127_p2 = scmp.lt.s32.totalorder %s2121_s14, %s2121_s14 }
 0x5f9   :  { %p2128_p3 = por %p2127_p2, %p2126_p1 }
 0x5fb   :  { %p2129_p4 = pnand %p2128_p3, %p2122_p0 }
 0x668   :  { %v1571_v29 = vpop.permute.xlu1 %1570  ;;  %v1567_v30 = vpop.permute.xlu0 %1566 }
 0x669   :  { %v1573_v32 = vsel %vm242_vm2, %v1560_v31, %v1567_v30 }
 0x66a   :  { %v1575_v33 = vsel %vm1574_vm7, %v1573_v32, %v1571_v29 }
 0x66b   :  { %v1576_v44 = vpack.c.bf16 %v1575_v33, %v1575_v33 }
 0x66d   :  { %2043 = vmatmul.mubr.msk.bf16.vlgmr.msra.gmra.mxu1 %vm1632_vm8, %v1576_v44 }
 0x72d   :  { %v1670_v35 = vpop.f32.mrf.mxu1 }
 0x72e   :  { %v1671_v36 = vadd.f32 %v1858_v34, %v1670_v35 }
 0x72f   :  { %v2044_v37 = vpop.f32.mrf.mxu1 }
 0x730   :  { %1677 = vst.msk [vmem:[#allocation10] sm:$0x3] %vm1676_vm9, %v1671_v36 }
 0x731   :  { %v1673_v38 = vpop.f32.mrf.mxu1 }
 0x732   :  { %2132 = shalt.err (!%p2129_p4)
}
 0x733   :  { %1687 = dma.vmem_to_hbm [thread:$0]  %s1685_s11, 32, %s2567_s5, [#allocation11]   ;;  %v2045_v39 = vpop.f32.mrf.mxu1 }
 0x734   :  { %2141 = dma.done.wait [#allocation11], 32  }
 0x735   :  { %2142 = vsyncadd [#allocation11], 4294967264 }
 0x736   :  { %1691 = vsyncpa [#allocation11], 1 }

</bundles_post_ra>
